<compile_context>
chip_gen: v5e
topology: v5e:2x2
jax: 0.10.0
libtpu: 0.0.40
codegen_flags: <defaults>
</compile_context>

<pallas_src>
import numpy as np
import jax
import jax.numpy as jnp
from jax import lax
from jax.experimental import pallas as pl
from jax.experimental.pallas import tpu as pltpu

_LANES = 128


def _round_up(v, m):
    return (v + m - 1) // m * m


# ----------------------- one-time weight packing ------------------------------

def _pack_weights(params, batch, channels, spatial):
    """Pack every parameter the kernel needs into ONE (rows, 128) f32 slab.

    Conv weights are stored pre-broadcast along lanes (one tile per im2col
    column, 8-row aligned); BN gamma/beta, the dense softconf matrix and the fc
    weights (bias folded as the last column) are stored compactly.  Returns
    (slab, layout) where `layout` is a static dict of row offsets/shapes.
    """
    blocks = params["blocks"]
    depth = len(blocks)
    n, c0 = batch, channels
    h1 = spatial // 2
    p1 = n * h1 * h1
    assert p1 <= _LANES, "first-layer position count must fit in 128 lanes"

    sections, layout, cursor = [], {}, 0

    def _push(sec):
        nonlocal cursor
        sections.append(sec)
        cursor += sec.shape[0]

    def _add_bcast_conv(name, wmat, cols):
        # wmat: (m, nk).  One lane-broadcast (m, cols) tile per column k, each
        # tile starting on an 8-row (sublane) boundary -> aligned kernel loads.
        m, nk = wmat.shape
        stride = _round_up(m, 8)
        sec = np.zeros((nk * stride, _LANES), np.float32)
        for k in range(nk):
            sec[k * stride:k * stride + m, :cols] = wmat[:, k:k + 1]
        layout[name] = dict(off=cursor, kstride=stride, m=m, cols=cols, nk=nk)
        _push(sec)

    def _add_dense(name, mat):
        m, cols = mat.shape
        assert cols <= _LANES
        sec = np.zeros((_round_up(m, 8), _LANES), np.float32)
        sec[:m, :cols] = mat
        layout[name] = dict(off=cursor, m=m, cols=cols)
        _push(sec)

    # conv1: (2*c0, 4*c0) matrix, columns ordered (cin, kh, kw) to match the
    # first-layer im2col row order.
    w1 = np.asarray(blocks[0]["w"], np.float32)
    _add_bcast_conv("conv1", w1.reshape(w1.shape[0], -1), p1)

    h, c_prev = h1, w1.shape[0]
    for i in range(1, depth):
        blk_p = blocks[i]
        w = np.asarray(blk_p["w"], np.float32)               # (cout, cin, 2, 2)
        cout, cin = w.shape[:2]
        assert cin == c_prev
        h //= 2
        blkw = n * h * h
        assert blkw <= _LANES
        # tap-major columns (kh, kw, cin) -- matches the tap-grouped lane order
        # of the previous layer's output.
        wmat = np.transpose(w, (0, 2, 3, 1)).reshape(cout, 4 * cin)
        _add_bcast_conv(f"conv{i + 1}_w", wmat, blkw)
        bn = np.stack([np.asarray(blk_p["gamma"], np.float32),
                       np.asarray(blk_p["beta"], np.float32)], axis=1)
        _add_dense(f"conv{i + 1}_bn", bn)                    # (cout, 2)
        c_prev = cout

    # softconf (k=2, s=1, pad=1, no bias) as a dense (out_pos, in_pos*C)
    # matrix; zero-padding taps contribute exactly 0 and are dropped.
    wsoft = np.asarray(params["softconf_w"], np.float32)     # (1, cd, 2, 2)
    cd = wsoft.shape[1]
    hd, ho = h, h + 1
    wsd = np.zeros((ho * ho, hd * hd * cd), np.float32)
    for i in range(ho):
        for j in range(ho):
            for kh in range(2):
                for kw in range(2):
                    yy, xx = i - 1 + kh, j - 1 + kw
                    if 0 <= yy < hd and 0 <= xx < hd:
                        p = yy * hd + xx
                        wsd[i * ho + j, p * cd:(p + 1) * cd] = wsoft[0, :, kh, kw]
    _add_dense("softconf", wsd)

    # fc layers in (out, in) orientation, bias folded in as the last column.
    for name in ("fc1", "fc2", "fc3"):
        wf, bf = params[name]
        _add_dense(name, np.concatenate(
            [np.asarray(wf, np.float32),
             np.asarray(bf, np.float32).reshape(-1, 1)], axis=1))

    slab = np.concatenate(sections, axis=0)                  # (rows, 128)
    return jnp.asarray(slab), layout


# ----------------------- per-call input (im2col, no gather) -------------------

def _im2col_first(x, depth):
    """First-layer im2col producing the tap-grouped lane order via a pure
    reshape/transpose (mixed-radix digit shuffle); replaces the old gather.

    Rows: (cin, kh, kw).  Lane digits (MSB -> LSB): level-1 (y,x) parities,
    level-2 parities, ..., final coarse (y, x) position, batch.  This makes
    every subsequent layer's im2col a set of static contiguous lane slices.
    """
    n, c0, hh, _ = x.shape
    L = depth - 1
    hd = hh // (2 ** depth)
    shape = (n, c0, hd) + (2,) * L + (2,) + (hd,) + (2,) * L + (2,)
    xr = x.reshape(shape)
    # axes: 0=n, 1=c, 2=yd, 3..2+L = pLy..p1y, 3+L=kh,
    #       4+L=xd, 5+L..4+2L = pLx..p1x, 5+2L=kw
    perm = [1, 3 + L, 5 + 2 * L]
    for l in range(1, L + 1):
        perm += [3 + L - l, 5 + 2 * L - l]
    perm += [2, 4 + L, 0]
    h1 = hh // 2
    return jnp.transpose(xr, perm).reshape(c0 * 4, n * h1 * h1)


# ----------------------------- fused kernel -----------------------------------

def _make_fused_kernel(layout, depth, batch, spatial):
    n = batch
    h1 = spatial // 2

    def _tree_sum(terms):
        # pairwise tree reduction -> breaks the serial FMA dependency chain
        while len(terms) > 1:
            nxt = [terms[i] + terms[i + 1] for i in range(0, len(terms) - 1, 2)]
            if len(terms) % 2:
                nxt.append(terms[-1])
            terms = nxt
        return terms[0]

    def _leaky(v):
        return jnp.where(v >= 0, v, 0.2 * v)

    def kernel(patches_ref, slab_ref, out_ref):
        patches = patches_ref[...]                              # (4*c0, P1)

        # ---- conv1 (k=2, s=2, no bias) + LeakyReLU(0.2) ----------------------
        # Pre-broadcast weight tiles * sublane-broadcast activation rows: no
        # in-kernel lane broadcast of weights.
        L1 = layout["conv1"]
        terms = []
        for k in range(L1["nk"]):
            r0 = L1["off"] + k * L1["kstride"]
            wk = slab_ref[r0:r0 + L1["m"], 0:L1["cols"]]        # (M1, P1)
            terms.append(wk * patches[k:k + 1, :])
        y = _leaky(_tree_sum(terms))                            # (M1, P1)

        h = h1
        c_prev = L1["m"]

        # ---- _block: Conv2d(k=2, s=2) + BatchNorm2d + LeakyReLU(0.2) ---------
        # Previous layer's lanes are grouped by stride-2 tap, so the im2col is
        # four static contiguous lane slices of y.
        for i in range(1, depth):
            h //= 2
            blk = n * h * h
            Lw = layout[f"conv{i + 1}_w"]
            Lb = layout[f"conv{i + 1}_bn"]
            cout = Lw["m"]
            terms = []
            for t in range(4):
                yt = y[:, t * blk:(t + 1) * blk]                # (c_prev, blk)
                for c in range(c_prev):
                    k = t * c_prev + c
                    r0 = Lw["off"] + k * Lw["kstride"]
                    wk = slab_ref[r0:r0 + cout, 0:blk]          # (cout, blk)
                    terms.append(wk * yt[c:c + 1, :])
            acc = _tree_sum(terms)                              # (cout, blk)
            # BatchNorm2d: training-mode batch stats, biased var, eps=1e-5;
            # two-pass variance for numerical robustness.
            bn = slab_ref[Lb["off"]:Lb["off"] + cout, 0:2]      # gamma | beta
            mean = jnp.mean(acc, axis=1, keepdims=True)
            cen = acc - mean
            var = jnp.mean(cen * cen, axis=1, keepdims=True)
            y = _leaky(bn[:, 0:1] * cen * lax.rsqrt(var + 1e-5) + bn[:, 1:2])
            c_prev = cout

        # ---- softconf: Conv2d(k=2, s=1, pad=1, no bias) ----------------------
        # Dense (out_positions, in_positions*C) matrix; output lands directly in
        # (features, batch) orientation == torch.flatten(start_dim=1).T.
        Ls = layout["softconf"]
        wsd = slab_ref[Ls["off"]:Ls["off"] + Ls["m"], 0:Ls["cols"]]
        terms = []
        for p in range(h * h):
            yp = y[:, p * n:(p + 1) * n]                        # (c_prev, N)
            for c in range(c_prev):
                k = p * c_prev + c
                terms.append(wsd[:, k:k + 1] * yp[c:c + 1, :])
        s = _tree_sum(terms)                                    # (ho*ho, N)

        # ---- fc1/fc2 (+ReLU), fc3 (+sigmoid); bias = last slab column --------
        def _linear(name, v):
            Lf = layout[name]
            wf = slab_ref[Lf["off"]:Lf["off"] + Lf["m"], 0:Lf["cols"]]
            kin = Lf["cols"] - 1
            ts = [wf[:, k:k + 1] * v[k:k + 1, :] for k in range(kin)]
            return _tree_sum(ts) + wf[:, kin:kin + 1]

        s = jnp.maximum(_linear("fc1", s), 0.0)
        s = jnp.maximum(_linear("fc2", s), 0.0)
        out_ref[...] = jax.nn.sigmoid(_linear("fc3", s))        # (1, N)

    return kernel


# ----------------------------- forward factory ---------------------------------

def make_discriminator_forward(params, *, batch, spatial):
    """One-time setup: validates shapes, packs the weight slab, builds the
    fused kernel.  Returns (jitted forward_fn(slab, x), slab)."""
    blocks = params["blocks"]
    depth = len(blocks)
    channels = blocks[0]["w"].shape[1]
    assert spatial % (2 ** depth) == 0, "spatial must be divisible by 2**depth"
    c_last = blocks[-1]["w"].shape[0]
    cd = params["softconf_w"].shape[1]
    assert cd == c_last, "softconf in_channels must equal conv output channels"
    hd = spatial // 2 ** depth
    ho = hd + 1
    assert params["fc1"][0].shape[1] == ho * ho, (
        "fc in_features must equal the flattened softconf output; the module's "
        "sizing formula only matches e.g. depth=2 with a 12x12 input")

    slab, layout = _pack_weights(params, batch, channels, spatial)
    kernel = _make_fused_kernel(layout, depth, batch, spatial)

    @jax.jit
    def forward(slab, x):
        patches = _im2col_first(x, depth)    # only per-call host-side work
        out = pl.pallas_call(
            kernel,
            out_shape=jax.ShapeDtypeStruct((1, batch), jnp.float32),
            in_specs=[pl.BlockSpec(memory_space=pltpu.MemorySpace.VMEM),
                      pl.BlockSpec(memory_space=pltpu.MemorySpace.VMEM)],
            out_specs=pl.BlockSpec(memory_space=pltpu.MemorySpace.VMEM),
        )(patches, slab)
        return out.reshape(batch, 1)

    return forward, slab


# ----------------------------- parameters --------------------------------------

def init_discriminator_params(key, channels, depth):
    """Deterministic synthetic parameters matching the PyTorch module shapes/init."""
    keys = iter(jax.random.split(key, 4 * depth + 16))
    blocks = [{"w": 0.02 * jax.random.normal(
        next(keys), (2 * channels, channels, 2, 2), jnp.float32)}]
    for i in range(1, depth):
        cin = 2 ** i * channels
        cout = 2 * cin
        blocks.append({
            "w": 0.02 * jax.random.normal(next(keys), (cout, cin, 2, 2), jnp.float32),
            "gamma": 0.02 * jax.random.normal(next(keys), (cout,), jnp.float32),
            "beta": jnp.zeros((cout,), jnp.float32),
        })

    soft_cin = 2 ** depth  # as in the reference module (assumes channels == 1)
    softconf_w = 0.02 * jax.random.normal(next(keys), (1, soft_cin, 2, 2), jnp.float32)

    conv_out_dim = (28 // 2 ** depth - 4 + 1) ** 2  # module's fc sizing formula

    def linear(k, fan_in, fan_out):
        k1, k2 = jax.random.split(k)
        bound = 1.0 / float(fan_in) ** 0.5          # PyTorch default Linear init
        w = jax.random.uniform(k1, (fan_out, fan_in), jnp.float32, -bound, bound)
        b = jax.random.uniform(k2, (fan_out,), jnp.float32, -bound, bound)
        return w, b

    return {
        "blocks": blocks,
        "softconf_w": softconf_w,
        "fc1": linear(next(keys), conv_out_dim, conv_out_dim),
        "fc2": linear(next(keys), conv_out_dim, conv_out_dim),
        "fc3": linear(next(keys), conv_out_dim, 1),
    }


# ----------------------------- pure-JAX reference ------------------------------

def _reference_forward(params, x):
    dn = ("NCHW", "OIHW", "NCHW")

    def conv_s2(v, w):
        return lax.conv_general_dilated(v, w, (2, 2), "VALID", dimension_numbers=dn)

    y = conv_s2(x, params["blocks"][0]["w"])
    y = jnp.where(y >= 0, y, 0.2 * y)
    for blk in params["blocks"][1:]:
        y = conv_s2(y, blk["w"])
        mean = y.mean(axis=(0, 2, 3), keepdims=True)
        var = ((y - mean) ** 2).mean(axis=(0, 2, 3), keepdims=True)
        y = (blk["gamma"].reshape(1, -1, 1, 1) * (y - mean) * lax.rsqrt(var + 1e-5)
             + blk["beta"].reshape(1, -1, 1, 1))
        y = jnp.where(y >= 0, y, 0.2 * y)
    y = lax.conv_general_dilated(y, params["softconf_w"], (1, 1),
                                 ((1, 1), (1, 1)), dimension_numbers=dn)
    y = y.reshape(y.shape[0], -1)
    w1, b1 = params["fc1"]; y = jax.nn.relu(y @ w1.T + b1)
    w2, b2 = params["fc2"]; y = jax.nn.relu(y @ w2.T + b2)
    w3, b3 = params["fc3"]
    return jax.nn.sigmoid(y @ w3.T + b3)


# ----------------------------- main ---------------------------------------------

if __name__ == "__main__":
    channels, depth = 1, 2          # MNIST-style discriminator (module assumes channels=1)
    batch, spatial = 2, 12          # 12x12 input -> softconf output flattens to fc1's 16 features

    key = jax.random.PRNGKey(0)
    kp, kx = jax.random.split(key)
    params = init_discriminator_params(kp, channels, depth)
    x = jax.random.normal(kx, (batch, channels, spatial, spatial), jnp.float32)

    # One-time packing + kernel build (hoisted out of the per-call path).
    forward, slab = make_discriminator_forward(params, batch=batch, spatial=spatial)

    out = jax.block_until_ready(forward(slab, x))
    ref = jax.block_until_ready(_reference_forward(params, x))

    assert out.shape == (batch, 1)
    assert bool(jnp.all((out >= 0.0) & (out <= 1.0)))
    assert bool(jnp.allclose(out, ref, rtol=5e-4, atol=1e-5)), (out, ref)
    print("KERNEL_OK")
</pallas_src>

<mosaic_0001>
module attributes {stable_mosaic.version = 11 : i64} {
  func.func @kernel(%arg0: memref<4x72xf32, #tpu.memory_space<vmem>>, %arg1: memref<160x128xf32, #tpu.memory_space<vmem>>, %arg2: memref<1x2xf32, #tpu.memory_space<vmem>>) attributes {dimension_semantics = [], scalar_prefetch = 0 : i64, scratch_operands = 0 : i64, tpu.core_type = #tpu.core_type<tc>} {
    %c0 = arith.constant 0 : index
    %c0_0 = arith.constant 0 : index
    %0 = vector.load %arg0[%c0, %c0_0] : memref<4x72xf32, #tpu.memory_space<vmem>>, vector<4x72xf32>
    %c0_1 = arith.constant 0 : index
    %c0_2 = arith.constant 0 : index
    %1 = vector.load %arg1[%c0_1, %c0_2] : memref<160x128xf32, #tpu.memory_space<vmem>>, vector<2x72xf32>
    %2 = vector.extract_strided_slice %0 {offsets = [0, 0], sizes = [1, 72], strides = [1, 1]} : vector<4x72xf32> to vector<1x72xf32>
    %3 = vector.broadcast %2 : vector<1x72xf32> to vector<2x72xf32>
    %4 = arith.mulf %1, %3 : vector<2x72xf32>
    %c8 = arith.constant 8 : index
    %c0_3 = arith.constant 0 : index
    %5 = vector.load %arg1[%c8, %c0_3] : memref<160x128xf32, #tpu.memory_space<vmem>>, vector<2x72xf32>
    %6 = vector.extract_strided_slice %0 {offsets = [1, 0], sizes = [1, 72], strides = [1, 1]} : vector<4x72xf32> to vector<1x72xf32>
    %7 = vector.broadcast %6 : vector<1x72xf32> to vector<2x72xf32>
    %8 = arith.mulf %5, %7 : vector<2x72xf32>
    %c16 = arith.constant 16 : index
    %c0_4 = arith.constant 0 : index
    %9 = vector.load %arg1[%c16, %c0_4] : memref<160x128xf32, #tpu.memory_space<vmem>>, vector<2x72xf32>
    %10 = vector.extract_strided_slice %0 {offsets = [2, 0], sizes = [1, 72], strides = [1, 1]} : vector<4x72xf32> to vector<1x72xf32>
    %11 = vector.broadcast %10 : vector<1x72xf32> to vector<2x72xf32>
    %12 = arith.mulf %9, %11 : vector<2x72xf32>
    %c24 = arith.constant 24 : index
    %c0_5 = arith.constant 0 : index
    %13 = vector.load %arg1[%c24, %c0_5] : memref<160x128xf32, #tpu.memory_space<vmem>>, vector<2x72xf32>
    %14 = vector.extract_strided_slice %0 {offsets = [3, 0], sizes = [1, 72], strides = [1, 1]} : vector<4x72xf32> to vector<1x72xf32>
    %15 = vector.broadcast %14 : vector<1x72xf32> to vector<2x72xf32>
    %16 = arith.mulf %13, %15 : vector<2x72xf32>
    %17 = arith.addf %4, %8 : vector<2x72xf32>
    %18 = arith.addf %12, %16 : vector<2x72xf32>
    %19 = arith.addf %17, %18 : vector<2x72xf32>
    %cst = arith.constant 0.000000e+00 : f32
    %20 = vector.broadcast %cst : f32 to vector<2x72xf32>
    %21 = arith.cmpf oge, %19, %20 : vector<2x72xf32>
    %cst_6 = arith.constant 2.000000e-01 : f32
    %22 = vector.broadcast %cst_6 : f32 to vector<2x72xf32>
    %23 = arith.mulf %22, %19 : vector<2x72xf32>
    %24 = arith.select %21, %19, %23 : vector<2x72xi1>, vector<2x72xf32>
    %25 = vector.extract_strided_slice %24 {offsets = [0, 0], sizes = [2, 18], strides = [1, 1]} : vector<2x72xf32> to vector<2x18xf32>
    %c32 = arith.constant 32 : index
    %c0_7 = arith.constant 0 : index
    %26 = vector.load %arg1[%c32, %c0_7] : memref<160x128xf32, #tpu.memory_space<vmem>>, vector<4x18xf32>
    %27 = vector.extract_strided_slice %25 {offsets = [0, 0], sizes = [1, 18], strides = [1, 1]} : vector<2x18xf32> to vector<1x18xf32>
    %28 = vector.broadcast %27 : vector<1x18xf32> to vector<4x18xf32>
    %29 = arith.mulf %26, %28 : vector<4x18xf32>
    %c40 = arith.constant 40 : index
    %c0_8 = arith.constant 0 : index
    %30 = vector.load %arg1[%c40, %c0_8] : memref<160x128xf32, #tpu.memory_space<vmem>>, vector<4x18xf32>
    %31 = vector.extract_strided_slice %25 {offsets = [1, 0], sizes = [1, 18], strides = [1, 1]} : vector<2x18xf32> to vector<1x18xf32>
    %32 = vector.broadcast %31 : vector<1x18xf32> to vector<4x18xf32>
    %33 = arith.mulf %30, %32 : vector<4x18xf32>
    %34 = vector.extract_strided_slice %24 {offsets = [0, 18], sizes = [2, 18], strides = [1, 1]} : vector<2x72xf32> to vector<2x18xf32>
    %c48 = arith.constant 48 : index
    %c0_9 = arith.constant 0 : index
    %35 = vector.load %arg1[%c48, %c0_9] : memref<160x128xf32, #tpu.memory_space<vmem>>, vector<4x18xf32>
    %36 = vector.extract_strided_slice %34 {offsets = [0, 0], sizes = [1, 18], strides = [1, 1]} : vector<2x18xf32> to vector<1x18xf32>
    %37 = vector.broadcast %36 : vector<1x18xf32> to vector<4x18xf32>
    %38 = arith.mulf %35, %37 : vector<4x18xf32>
    %c56 = arith.constant 56 : index
    %c0_10 = arith.constant 0 : index
    %39 = vector.load %arg1[%c56, %c0_10] : memref<160x128xf32, #tpu.memory_space<vmem>>, vector<4x18xf32>
    %40 = vector.extract_strided_slice %34 {offsets = [1, 0], sizes = [1, 18], strides = [1, 1]} : vector<2x18xf32> to vector<1x18xf32>
    %41 = vector.broadcast %40 : vector<1x18xf32> to vector<4x18xf32>
    %42 = arith.mulf %39, %41 : vector<4x18xf32>
    %43 = vector.extract_strided_slice %24 {offsets = [0, 36], sizes = [2, 18], strides = [1, 1]} : vector<2x72xf32> to vector<2x18xf32>
    %c64 = arith.constant 64 : index
    %c0_11 = arith.constant 0 : index
    %44 = vector.load %arg1[%c64, %c0_11] : memref<160x128xf32, #tpu.memory_space<vmem>>, vector<4x18xf32>
    %45 = vector.extract_strided_slice %43 {offsets = [0, 0], sizes = [1, 18], strides = [1, 1]} : vector<2x18xf32> to vector<1x18xf32>
    %46 = vector.broadcast %45 : vector<1x18xf32> to vector<4x18xf32>
    %47 = arith.mulf %44, %46 : vector<4x18xf32>
    %c72 = arith.constant 72 : index
    %c0_12 = arith.constant 0 : index
    %48 = vector.load %arg1[%c72, %c0_12] : memref<160x128xf32, #tpu.memory_space<vmem>>, vector<4x18xf32>
    %49 = vector.extract_strided_slice %43 {offsets = [1, 0], sizes = [1, 18], strides = [1, 1]} : vector<2x18xf32> to vector<1x18xf32>
    %50 = vector.broadcast %49 : vector<1x18xf32> to vector<4x18xf32>
    %51 = arith.mulf %48, %50 : vector<4x18xf32>
    %52 = vector.extract_strided_slice %24 {offsets = [0, 54], sizes = [2, 18], strides = [1, 1]} : vector<2x72xf32> to vector<2x18xf32>
    %c80 = arith.constant 80 : index
    %c0_13 = arith.constant 0 : index
    %53 = vector.load %arg1[%c80, %c0_13] : memref<160x128xf32, #tpu.memory_space<vmem>>, vector<4x18xf32>
    %54 = vector.extract_strided_slice %52 {offsets = [0, 0], sizes = [1, 18], strides = [1, 1]} : vector<2x18xf32> to vector<1x18xf32>
    %55 = vector.broadcast %54 : vector<1x18xf32> to vector<4x18xf32>
    %56 = arith.mulf %53, %55 : vector<4x18xf32>
    %c88 = arith.constant 88 : index
    %c0_14 = arith.constant 0 : index
    %57 = vector.load %arg1[%c88, %c0_14] : memref<160x128xf32, #tpu.memory_space<vmem>>, vector<4x18xf32>
    %58 = vector.extract_strided_slice %52 {offsets = [1, 0], sizes = [1, 18], strides = [1, 1]} : vector<2x18xf32> to vector<1x18xf32>
    %59 = vector.broadcast %58 : vector<1x18xf32> to vector<4x18xf32>
    %60 = arith.mulf %57, %59 : vector<4x18xf32>
    %61 = arith.addf %29, %33 : vector<4x18xf32>
    %62 = arith.addf %38, %42 : vector<4x18xf32>
    %63 = arith.addf %47, %51 : vector<4x18xf32>
    %64 = arith.addf %56, %60 : vector<4x18xf32>
    %65 = arith.addf %61, %62 : vector<4x18xf32>
    %66 = arith.addf %63, %64 : vector<4x18xf32>
    %67 = arith.addf %65, %66 : vector<4x18xf32>
    %c96 = arith.constant 96 : index
    %c0_15 = arith.constant 0 : index
    %68 = vector.load %arg1[%c96, %c0_15] : memref<160x128xf32, #tpu.memory_space<vmem>>, vector<4x2xf32>
    %cst_16 = arith.constant dense<0.000000e+00> : vector<4xf32>
    %69 = vector.multi_reduction <add>, %67, %cst_16 [1] : vector<4x18xf32> to vector<4xf32>
    %70 = vector.shape_cast %69 : vector<4xf32> to vector<4x1xf32>
    %cst_17 = arith.constant 1.800000e+01 : f32
    %71 = vector.broadcast %cst_17 : f32 to vector<4x1xf32>
    %72 = arith.divf %70, %71 : vector<4x1xf32>
    %73 = vector.broadcast %72 : vector<4x1xf32> to vector<4x18xf32>
    %74 = arith.subf %67, %73 : vector<4x18xf32>
    %75 = arith.mulf %74, %74 : vector<4x18xf32>
    %cst_18 = arith.constant dense<0.000000e+00> : vector<4xf32>
    %76 = vector.multi_reduction <add>, %75, %cst_18 [1] : vector<4x18xf32> to vector<4xf32>
    %77 = vector.shape_cast %76 : vector<4xf32> to vector<4x1xf32>
    %cst_19 = arith.constant 1.800000e+01 : f32
    %78 = vector.broadcast %cst_19 : f32 to vector<4x1xf32>
    %79 = arith.divf %77, %78 : vector<4x1xf32>
    %80 = vector.extract_strided_slice %68 {offsets = [0, 0], sizes = [4, 1], strides = [1, 1]} : vector<4x2xf32> to vector<4x1xf32>
    %81 = vector.broadcast %80 : vector<4x1xf32> to vector<4x18xf32>
    %82 = arith.mulf %81, %74 : vector<4x18xf32>
    %cst_20 = arith.constant 9.99999974E-6 : f32
    %83 = vector.broadcast %cst_20 : f32 to vector<4x1xf32>
    %84 = arith.addf %79, %83 : vector<4x1xf32>
    %85 = math.rsqrt %84 : vector<4x1xf32>
    %86 = vector.broadcast %85 : vector<4x1xf32> to vector<4x18xf32>
    %87 = arith.mulf %82, %86 : vector<4x18xf32>
    %88 = vector.extract_strided_slice %68 {offsets = [0, 1], sizes = [4, 1], strides = [1, 1]} : vector<4x2xf32> to vector<4x1xf32>
    %89 = vector.broadcast %88 : vector<4x1xf32> to vector<4x18xf32>
    %90 = arith.addf %87, %89 : vector<4x18xf32>
    %cst_21 = arith.constant 0.000000e+00 : f32
    %91 = vector.broadcast %cst_21 : f32 to vector<4x18xf32>
    %92 = arith.cmpf oge, %90, %91 : vector<4x18xf32>
    %cst_22 = arith.constant 2.000000e-01 : f32
    %93 = vector.broadcast %cst_22 : f32 to vector<4x18xf32>
    %94 = arith.mulf %93, %90 : vector<4x18xf32>
    %95 = arith.select %92, %90, %94 : vector<4x18xi1>, vector<4x18xf32>
    %c104 = arith.constant 104 : index
    %c0_23 = arith.constant 0 : index
    %96 = vector.load %arg1[%c104, %c0_23] : memref<160x128xf32, #tpu.memory_space<vmem>>, vector<16x36xf32>
    %97 = vector.extract_strided_slice %95 {offsets = [0, 0], sizes = [4, 2], strides = [1, 1]} : vector<4x18xf32> to vector<4x2xf32>
    %98 = vector.extract_strided_slice %96 {offsets = [0, 0], sizes = [16, 1], strides = [1, 1]} : vector<16x36xf32> to vector<16x1xf32>
    %99 = vector.extract_strided_slice %97 {offsets = [0, 0], sizes = [1, 2], strides = [1, 1]} : vector<4x2xf32> to vector<1x2xf32>
    %100 = vector.broadcast %98 : vector<16x1xf32> to vector<16x2xf32>
    %101 = vector.broadcast %99 : vector<1x2xf32> to vector<16x2xf32>
    %102 = arith.mulf %100, %101 : vector<16x2xf32>
    %103 = vector.extract_strided_slice %96 {offsets = [0, 1], sizes = [16, 1], strides = [1, 1]} : vector<16x36xf32> to vector<16x1xf32>
    %104 = vector.extract_strided_slice %97 {offsets = [1, 0], sizes = [1, 2], strides = [1, 1]} : vector<4x2xf32> to vector<1x2xf32>
    %105 = vector.broadcast %103 : vector<16x1xf32> to vector<16x2xf32>
    %106 = vector.broadcast %104 : vector<1x2xf32> to vector<16x2xf32>
    %107 = arith.mulf %105, %106 : vector<16x2xf32>
    %108 = vector.extract_strided_slice %96 {offsets = [0, 2], sizes = [16, 1], strides = [1, 1]} : vector<16x36xf32> to vector<16x1xf32>
    %109 = vector.extract_strided_slice %97 {offsets = [2, 0], sizes = [1, 2], strides = [1, 1]} : vector<4x2xf32> to vector<1x2xf32>
    %110 = vector.broadcast %108 : vector<16x1xf32> to vector<16x2xf32>
    %111 = vector.broadcast %109 : vector<1x2xf32> to vector<16x2xf32>
    %112 = arith.mulf %110, %111 : vector<16x2xf32>
    %113 = vector.extract_strided_slice %96 {offsets = [0, 3], sizes = [16, 1], strides = [1, 1]} : vector<16x36xf32> to vector<16x1xf32>
    %114 = vector.extract_strided_slice %97 {offsets = [3, 0], sizes = [1, 2], strides = [1, 1]} : vector<4x2xf32> to vector<1x2xf32>
    %115 = vector.broadcast %113 : vector<16x1xf32> to vector<16x2xf32>
    %116 = vector.broadcast %114 : vector<1x2xf32> to vector<16x2xf32>
    %117 = arith.mulf %115, %116 : vector<16x2xf32>
    %118 = vector.extract_strided_slice %95 {offsets = [0, 2], sizes = [4, 2], strides = [1, 1]} : vector<4x18xf32> to vector<4x2xf32>
    %119 = vector.extract_strided_slice %96 {offsets = [0, 4], sizes = [16, 1], strides = [1, 1]} : vector<16x36xf32> to vector<16x1xf32>
    %120 = vector.extract_strided_slice %118 {offsets = [0, 0], sizes = [1, 2], strides = [1, 1]} : vector<4x2xf32> to vector<1x2xf32>
    %121 = vector.broadcast %119 : vector<16x1xf32> to vector<16x2xf32>
    %122 = vector.broadcast %120 : vector<1x2xf32> to vector<16x2xf32>
    %123 = arith.mulf %121, %122 : vector<16x2xf32>
    %124 = vector.extract_strided_slice %96 {offsets = [0, 5], sizes = [16, 1], strides = [1, 1]} : vector<16x36xf32> to vector<16x1xf32>
    %125 = vector.extract_strided_slice %118 {offsets = [1, 0], sizes = [1, 2], strides = [1, 1]} : vector<4x2xf32> to vector<1x2xf32>
    %126 = vector.broadcast %124 : vector<16x1xf32> to vector<16x2xf32>
    %127 = vector.broadcast %125 : vector<1x2xf32> to vector<16x2xf32>
    %128 = arith.mulf %126, %127 : vector<16x2xf32>
    %129 = vector.extract_strided_slice %96 {offsets = [0, 6], sizes = [16, 1], strides = [1, 1]} : vector<16x36xf32> to vector<16x1xf32>
    %130 = vector.extract_strided_slice %118 {offsets = [2, 0], sizes = [1, 2], strides = [1, 1]} : vector<4x2xf32> to vector<1x2xf32>
    %131 = vector.broadcast %129 : vector<16x1xf32> to vector<16x2xf32>
    %132 = vector.broadcast %130 : vector<1x2xf32> to vector<16x2xf32>
    %133 = arith.mulf %131, %132 : vector<16x2xf32>
    %134 = vector.extract_strided_slice %96 {offsets = [0, 7], sizes = [16, 1], strides = [1, 1]} : vector<16x36xf32> to vector<16x1xf32>
    %135 = vector.extract_strided_slice %118 {offsets = [3, 0], sizes = [1, 2], strides = [1, 1]} : vector<4x2xf32> to vector<1x2xf32>
    %136 = vector.broadcast %134 : vector<16x1xf32> to vector<16x2xf32>
    %137 = vector.broadcast %135 : vector<1x2xf32> to vector<16x2xf32>
    %138 = arith.mulf %136, %137 : vector<16x2xf32>
    %139 = vector.extract_strided_slice %95 {offsets = [0, 4], sizes = [4, 2], strides = [1, 1]} : vector<4x18xf32> to vector<4x2xf32>
    %140 = vector.extract_strided_slice %96 {offsets = [0, 8], sizes = [16, 1], strides = [1, 1]} : vector<16x36xf32> to vector<16x1xf32>
    %141 = vector.extract_strided_slice %139 {offsets = [0, 0], sizes = [1, 2], strides = [1, 1]} : vector<4x2xf32> to vector<1x2xf32>
    %142 = vector.broadcast %140 : vector<16x1xf32> to vector<16x2xf32>
    %143 = vector.broadcast %141 : vector<1x2xf32> to vector<16x2xf32>
    %144 = arith.mulf %142, %143 : vector<16x2xf32>
    %145 = vector.extract_strided_slice %96 {offsets = [0, 9], sizes = [16, 1], strides = [1, 1]} : vector<16x36xf32> to vector<16x1xf32>
    %146 = vector.extract_strided_slice %139 {offsets = [1, 0], sizes = [1, 2], strides = [1, 1]} : vector<4x2xf32> to vector<1x2xf32>
    %147 = vector.broadcast %145 : vector<16x1xf32> to vector<16x2xf32>
    %148 = vector.broadcast %146 : vector<1x2xf32> to vector<16x2xf32>
    %149 = arith.mulf %147, %148 : vector<16x2xf32>
    %150 = vector.extract_strided_slice %96 {offsets = [0, 10], sizes = [16, 1], strides = [1, 1]} : vector<16x36xf32> to vector<16x1xf32>
    %151 = vector.extract_strided_slice %139 {offsets = [2, 0], sizes = [1, 2], strides = [1, 1]} : vector<4x2xf32> to vector<1x2xf32>
    %152 = vector.broadcast %150 : vector<16x1xf32> to vector<16x2xf32>
    %153 = vector.broadcast %151 : vector<1x2xf32> to vector<16x2xf32>
    %154 = arith.mulf %152, %153 : vector<16x2xf32>
    %155 = vector.extract_strided_slice %96 {offsets = [0, 11], sizes = [16, 1], strides = [1, 1]} : vector<16x36xf32> to vector<16x1xf32>
    %156 = vector.extract_strided_slice %139 {offsets = [3, 0], sizes = [1, 2], strides = [1, 1]} : vector<4x2xf32> to vector<1x2xf32>
    %157 = vector.broadcast %155 : vector<16x1xf32> to vector<16x2xf32>
    %158 = vector.broadcast %156 : vector<1x2xf32> to vector<16x2xf32>
    %159 = arith.mulf %157, %158 : vector<16x2xf32>
    %160 = vector.extract_strided_slice %95 {offsets = [0, 6], sizes = [4, 2], strides = [1, 1]} : vector<4x18xf32> to vector<4x2xf32>
    %161 = vector.extract_strided_slice %96 {offsets = [0, 12], sizes = [16, 1], strides = [1, 1]} : vector<16x36xf32> to vector<16x1xf32>
    %162 = vector.extract_strided_slice %160 {offsets = [0, 0], sizes = [1, 2], strides = [1, 1]} : vector<4x2xf32> to vector<1x2xf32>
    %163 = vector.broadcast %161 : vector<16x1xf32> to vector<16x2xf32>
    %164 = vector.broadcast %162 : vector<1x2xf32> to vector<16x2xf32>
    %165 = arith.mulf %163, %164 : vector<16x2xf32>
    %166 = vector.extract_strided_slice %96 {offsets = [0, 13], sizes = [16, 1], strides = [1, 1]} : vector<16x36xf32> to vector<16x1xf32>
    %167 = vector.extract_strided_slice %160 {offsets = [1, 0], sizes = [1, 2], strides = [1, 1]} : vector<4x2xf32> to vector<1x2xf32>
    %168 = vector.broadcast %166 : vector<16x1xf32> to vector<16x2xf32>
    %169 = vector.broadcast %167 : vector<1x2xf32> to vector<16x2xf32>
    %170 = arith.mulf %168, %169 : vector<16x2xf32>
    %171 = vector.extract_strided_slice %96 {offsets = [0, 14], sizes = [16, 1], strides = [1, 1]} : vector<16x36xf32> to vector<16x1xf32>
    %172 = vector.extract_strided_slice %160 {offsets = [2, 0], sizes = [1, 2], strides = [1, 1]} : vector<4x2xf32> to vector<1x2xf32>
    %173 = vector.broadcast %171 : vector<16x1xf32> to vector<16x2xf32>
    %174 = vector.broadcast %172 : vector<1x2xf32> to vector<16x2xf32>
    %175 = arith.mulf %173, %174 : vector<16x2xf32>
    %176 = vector.extract_strided_slice %96 {offsets = [0, 15], sizes = [16, 1], strides = [1, 1]} : vector<16x36xf32> to vector<16x1xf32>
    %177 = vector.extract_strided_slice %160 {offsets = [3, 0], sizes = [1, 2], strides = [1, 1]} : vector<4x2xf32> to vector<1x2xf32>
    %178 = vector.broadcast %176 : vector<16x1xf32> to vector<16x2xf32>
    %179 = vector.broadcast %177 : vector<1x2xf32> to vector<16x2xf32>
    %180 = arith.mulf %178, %179 : vector<16x2xf32>
    %181 = vector.extract_strided_slice %95 {offsets = [0, 8], sizes = [4, 2], strides = [1, 1]} : vector<4x18xf32> to vector<4x2xf32>
    %182 = vector.extract_strided_slice %96 {offsets = [0, 16], sizes = [16, 1], strides = [1, 1]} : vector<16x36xf32> to vector<16x1xf32>
    %183 = vector.extract_strided_slice %181 {offsets = [0, 0], sizes = [1, 2], strides = [1, 1]} : vector<4x2xf32> to vector<1x2xf32>
    %184 = vector.broadcast %182 : vector<16x1xf32> to vector<16x2xf32>
    %185 = vector.broadcast %183 : vector<1x2xf32> to vector<16x2xf32>
    %186 = arith.mulf %184, %185 : vector<16x2xf32>
    %187 = vector.extract_strided_slice %96 {offsets = [0, 17], sizes = [16, 1], strides = [1, 1]} : vector<16x36xf32> to vector<16x1xf32>
    %188 = vector.extract_strided_slice %181 {offsets = [1, 0], sizes = [1, 2], strides = [1, 1]} : vector<4x2xf32> to vector<1x2xf32>
    %189 = vector.broadcast %187 : vector<16x1xf32> to vector<16x2xf32>
    %190 = vector.broadcast %188 : vector<1x2xf32> to vector<16x2xf32>
    %191 = arith.mulf %189, %190 : vector<16x2xf32>
    %192 = vector.extract_strided_slice %96 {offsets = [0, 18], sizes = [16, 1], strides = [1, 1]} : vector<16x36xf32> to vector<16x1xf32>
    %193 = vector.extract_strided_slice %181 {offsets = [2, 0], sizes = [1, 2], strides = [1, 1]} : vector<4x2xf32> to vector<1x2xf32>
    %194 = vector.broadcast %192 : vector<16x1xf32> to vector<16x2xf32>
    %195 = vector.broadcast %193 : vector<1x2xf32> to vector<16x2xf32>
    %196 = arith.mulf %194, %195 : vector<16x2xf32>
    %197 = vector.extract_strided_slice %96 {offsets = [0, 19], sizes = [16, 1], strides = [1, 1]} : vector<16x36xf32> to vector<16x1xf32>
    %198 = vector.extract_strided_slice %181 {offsets = [3, 0], sizes = [1, 2], strides = [1, 1]} : vector<4x2xf32> to vector<1x2xf32>
    %199 = vector.broadcast %197 : vector<16x1xf32> to vector<16x2xf32>
    %200 = vector.broadcast %198 : vector<1x2xf32> to vector<16x2xf32>
    %201 = arith.mulf %199, %200 : vector<16x2xf32>
    %202 = vector.extract_strided_slice %95 {offsets = [0, 10], sizes = [4, 2], strides = [1, 1]} : vector<4x18xf32> to vector<4x2xf32>
    %203 = vector.extract_strided_slice %96 {offsets = [0, 20], sizes = [16, 1], strides = [1, 1]} : vector<16x36xf32> to vector<16x1xf32>
    %204 = vector.extract_strided_slice %202 {offsets = [0, 0], sizes = [1, 2], strides = [1, 1]} : vector<4x2xf32> to vector<1x2xf32>
    %205 = vector.broadcast %203 : vector<16x1xf32> to vector<16x2xf32>
    %206 = vector.broadcast %204 : vector<1x2xf32> to vector<16x2xf32>
    %207 = arith.mulf %205, %206 : vector<16x2xf32>
    %208 = vector.extract_strided_slice %96 {offsets = [0, 21], sizes = [16, 1], strides = [1, 1]} : vector<16x36xf32> to vector<16x1xf32>
    %209 = vector.extract_strided_slice %202 {offsets = [1, 0], sizes = [1, 2], strides = [1, 1]} : vector<4x2xf32> to vector<1x2xf32>
    %210 = vector.broadcast %208 : vector<16x1xf32> to vector<16x2xf32>
    %211 = vector.broadcast %209 : vector<1x2xf32> to vector<16x2xf32>
    %212 = arith.mulf %210, %211 : vector<16x2xf32>
    %213 = vector.extract_strided_slice %96 {offsets = [0, 22], sizes = [16, 1], strides = [1, 1]} : vector<16x36xf32> to vector<16x1xf32>
    %214 = vector.extract_strided_slice %202 {offsets = [2, 0], sizes = [1, 2], strides = [1, 1]} : vector<4x2xf32> to vector<1x2xf32>
    %215 = vector.broadcast %213 : vector<16x1xf32> to vector<16x2xf32>
    %216 = vector.broadcast %214 : vector<1x2xf32> to vector<16x2xf32>
    %217 = arith.mulf %215, %216 : vector<16x2xf32>
    %218 = vector.extract_strided_slice %96 {offsets = [0, 23], sizes = [16, 1], strides = [1, 1]} : vector<16x36xf32> to vector<16x1xf32>
    %219 = vector.extract_strided_slice %202 {offsets = [3, 0], sizes = [1, 2], strides = [1, 1]} : vector<4x2xf32> to vector<1x2xf32>
    %220 = vector.broadcast %218 : vector<16x1xf32> to vector<16x2xf32>
    %221 = vector.broadcast %219 : vector<1x2xf32> to vector<16x2xf32>
    %222 = arith.mulf %220, %221 : vector<16x2xf32>
    %223 = vector.extract_strided_slice %95 {offsets = [0, 12], sizes = [4, 2], strides = [1, 1]} : vector<4x18xf32> to vector<4x2xf32>
    %224 = vector.extract_strided_slice %96 {offsets = [0, 24], sizes = [16, 1], strides = [1, 1]} : vector<16x36xf32> to vector<16x1xf32>
    %225 = vector.extract_strided_slice %223 {offsets = [0, 0], sizes = [1, 2], strides = [1, 1]} : vector<4x2xf32> to vector<1x2xf32>
    %226 = vector.broadcast %224 : vector<16x1xf32> to vector<16x2xf32>
    %227 = vector.broadcast %225 : vector<1x2xf32> to vector<16x2xf32>
    %228 = arith.mulf %226, %227 : vector<16x2xf32>
    %229 = vector.extract_strided_slice %96 {offsets = [0, 25], sizes = [16, 1], strides = [1, 1]} : vector<16x36xf32> to vector<16x1xf32>
    %230 = vector.extract_strided_slice %223 {offsets = [1, 0], sizes = [1, 2], strides = [1, 1]} : vector<4x2xf32> to vector<1x2xf32>
    %231 = vector.broadcast %229 : vector<16x1xf32> to vector<16x2xf32>
    %232 = vector.broadcast %230 : vector<1x2xf32> to vector<16x2xf32>
    %233 = arith.mulf %231, %232 : vector<16x2xf32>
    %234 = vector.extract_strided_slice %96 {offsets = [0, 26], sizes = [16, 1], strides = [1, 1]} : vector<16x36xf32> to vector<16x1xf32>
    %235 = vector.extract_strided_slice %223 {offsets = [2, 0], sizes = [1, 2], strides = [1, 1]} : vector<4x2xf32> to vector<1x2xf32>
    %236 = vector.broadcast %234 : vector<16x1xf32> to vector<16x2xf32>
    %237 = vector.broadcast %235 : vector<1x2xf32> to vector<16x2xf32>
    %238 = arith.mulf %236, %237 : vector<16x2xf32>
    %239 = vector.extract_strided_slice %96 {offsets = [0, 27], sizes = [16, 1], strides = [1, 1]} : vector<16x36xf32> to vector<16x1xf32>
    %240 = vector.extract_strided_slice %223 {offsets = [3, 0], sizes = [1, 2], strides = [1, 1]} : vector<4x2xf32> to vector<1x2xf32>
    %241 = vector.broadcast %239 : vector<16x1xf32> to vector<16x2xf32>
    %242 = vector.broadcast %240 : vector<1x2xf32> to vector<16x2xf32>
    %243 = arith.mulf %241, %242 : vector<16x2xf32>
    %244 = vector.extract_strided_slice %95 {offsets = [0, 14], sizes = [4, 2], strides = [1, 1]} : vector<4x18xf32> to vector<4x2xf32>
    %245 = vector.extract_strided_slice %96 {offsets = [0, 28], sizes = [16, 1], strides = [1, 1]} : vector<16x36xf32> to vector<16x1xf32>
    %246 = vector.extract_strided_slice %244 {offsets = [0, 0], sizes = [1, 2], strides = [1, 1]} : vector<4x2xf32> to vector<1x2xf32>
    %247 = vector.broadcast %245 : vector<16x1xf32> to vector<16x2xf32>
    %248 = vector.broadcast %246 : vector<1x2xf32> to vector<16x2xf32>
    %249 = arith.mulf %247, %248 : vector<16x2xf32>
    %250 = vector.extract_strided_slice %96 {offsets = [0, 29], sizes = [16, 1], strides = [1, 1]} : vector<16x36xf32> to vector<16x1xf32>
    %251 = vector.extract_strided_slice %244 {offsets = [1, 0], sizes = [1, 2], strides = [1, 1]} : vector<4x2xf32> to vector<1x2xf32>
    %252 = vector.broadcast %250 : vector<16x1xf32> to vector<16x2xf32>
    %253 = vector.broadcast %251 : vector<1x2xf32> to vector<16x2xf32>
    %254 = arith.mulf %252, %253 : vector<16x2xf32>
    %255 = vector.extract_strided_slice %96 {offsets = [0, 30], sizes = [16, 1], strides = [1, 1]} : vector<16x36xf32> to vector<16x1xf32>
    %256 = vector.extract_strided_slice %244 {offsets = [2, 0], sizes = [1, 2], strides = [1, 1]} : vector<4x2xf32> to vector<1x2xf32>
    %257 = vector.broadcast %255 : vector<16x1xf32> to vector<16x2xf32>
    %258 = vector.broadcast %256 : vector<1x2xf32> to vector<16x2xf32>
    %259 = arith.mulf %257, %258 : vector<16x2xf32>
    %260 = vector.extract_strided_slice %96 {offsets = [0, 31], sizes = [16, 1], strides = [1, 1]} : vector<16x36xf32> to vector<16x1xf32>
    %261 = vector.extract_strided_slice %244 {offsets = [3, 0], sizes = [1, 2], strides = [1, 1]} : vector<4x2xf32> to vector<1x2xf32>
    %262 = vector.broadcast %260 : vector<16x1xf32> to vector<16x2xf32>
    %263 = vector.broadcast %261 : vector<1x2xf32> to vector<16x2xf32>
    %264 = arith.mulf %262, %263 : vector<16x2xf32>
    %265 = vector.extract_strided_slice %95 {offsets = [0, 16], sizes = [4, 2], strides = [1, 1]} : vector<4x18xf32> to vector<4x2xf32>
    %266 = vector.extract_strided_slice %96 {offsets = [0, 32], sizes = [16, 1], strides = [1, 1]} : vector<16x36xf32> to vector<16x1xf32>
    %267 = vector.extract_strided_slice %265 {offsets = [0, 0], sizes = [1, 2], strides = [1, 1]} : vector<4x2xf32> to vector<1x2xf32>
    %268 = vector.broadcast %266 : vector<16x1xf32> to vector<16x2xf32>
    %269 = vector.broadcast %267 : vector<1x2xf32> to vector<16x2xf32>
    %270 = arith.mulf %268, %269 : vector<16x2xf32>
    %271 = vector.extract_strided_slice %96 {offsets = [0, 33], sizes = [16, 1], strides = [1, 1]} : vector<16x36xf32> to vector<16x1xf32>
    %272 = vector.extract_strided_slice %265 {offsets = [1, 0], sizes = [1, 2], strides = [1, 1]} : vector<4x2xf32> to vector<1x2xf32>
    %273 = vector.broadcast %271 : vector<16x1xf32> to vector<16x2xf32>
    %274 = vector.broadcast %272 : vector<1x2xf32> to vector<16x2xf32>
    %275 = arith.mulf %273, %274 : vector<16x2xf32>
    %276 = vector.extract_strided_slice %96 {offsets = [0, 34], sizes = [16, 1], strides = [1, 1]} : vector<16x36xf32> to vector<16x1xf32>
    %277 = vector.extract_strided_slice %265 {offsets = [2, 0], sizes = [1, 2], strides = [1, 1]} : vector<4x2xf32> to vector<1x2xf32>
    %278 = vector.broadcast %276 : vector<16x1xf32> to vector<16x2xf32>
    %279 = vector.broadcast %277 : vector<1x2xf32> to vector<16x2xf32>
    %280 = arith.mulf %278, %279 : vector<16x2xf32>
    %281 = vector.extract_strided_slice %96 {offsets = [0, 35], sizes = [16, 1], strides = [1, 1]} : vector<16x36xf32> to vector<16x1xf32>
    %282 = vector.extract_strided_slice %265 {offsets = [3, 0], sizes = [1, 2], strides = [1, 1]} : vector<4x2xf32> to vector<1x2xf32>
    %283 = vector.broadcast %281 : vector<16x1xf32> to vector<16x2xf32>
    %284 = vector.broadcast %282 : vector<1x2xf32> to vector<16x2xf32>
    %285 = arith.mulf %283, %284 : vector<16x2xf32>
    %286 = arith.addf %102, %107 : vector<16x2xf32>
    %287 = arith.addf %112, %117 : vector<16x2xf32>
    %288 = arith.addf %123, %128 : vector<16x2xf32>
    %289 = arith.addf %133, %138 : vector<16x2xf32>
    %290 = arith.addf %144, %149 : vector<16x2xf32>
    %291 = arith.addf %154, %159 : vector<16x2xf32>
    %292 = arith.addf %165, %170 : vector<16x2xf32>
    %293 = arith.addf %175, %180 : vector<16x2xf32>
    %294 = arith.addf %186, %191 : vector<16x2xf32>
    %295 = arith.addf %196, %201 : vector<16x2xf32>
    %296 = arith.addf %207, %212 : vector<16x2xf32>
    %297 = arith.addf %217, %222 : vector<16x2xf32>
    %298 = arith.addf %228, %233 : vector<16x2xf32>
    %299 = arith.addf %238, %243 : vector<16x2xf32>
    %300 = arith.addf %249, %254 : vector<16x2xf32>
    %301 = arith.addf %259, %264 : vector<16x2xf32>
    %302 = arith.addf %270, %275 : vector<16x2xf32>
    %303 = arith.addf %280, %285 : vector<16x2xf32>
    %304 = arith.addf %286, %287 : vector<16x2xf32>
    %305 = arith.addf %288, %289 : vector<16x2xf32>
    %306 = arith.addf %290, %291 : vector<16x2xf32>
    %307 = arith.addf %292, %293 : vector<16x2xf32>
    %308 = arith.addf %294, %295 : vector<16x2xf32>
    %309 = arith.addf %296, %297 : vector<16x2xf32>
    %310 = arith.addf %298, %299 : vector<16x2xf32>
    %311 = arith.addf %300, %301 : vector<16x2xf32>
    %312 = arith.addf %302, %303 : vector<16x2xf32>
    %313 = arith.addf %304, %305 : vector<16x2xf32>
    %314 = arith.addf %306, %307 : vector<16x2xf32>
    %315 = arith.addf %308, %309 : vector<16x2xf32>
    %316 = arith.addf %310, %311 : vector<16x2xf32>
    %317 = arith.addf %313, %314 : vector<16x2xf32>
    %318 = arith.addf %315, %316 : vector<16x2xf32>
    %319 = arith.addf %317, %318 : vector<16x2xf32>
    %320 = arith.addf %319, %312 : vector<16x2xf32>
    %c120 = arith.constant 120 : index
    %c0_24 = arith.constant 0 : index
    %321 = vector.load %arg1[%c120, %c0_24] : memref<160x128xf32, #tpu.memory_space<vmem>>, vector<16x17xf32>
    %322 = vector.extract_strided_slice %321 {offsets = [0, 0], sizes = [16, 1], strides = [1, 1]} : vector<16x17xf32> to vector<16x1xf32>
    %323 = vector.extract_strided_slice %320 {offsets = [0, 0], sizes = [1, 2], strides = [1, 1]} : vector<16x2xf32> to vector<1x2xf32>
    %324 = vector.broadcast %322 : vector<16x1xf32> to vector<16x2xf32>
    %325 = vector.broadcast %323 : vector<1x2xf32> to vector<16x2xf32>
    %326 = arith.mulf %324, %325 : vector<16x2xf32>
    %327 = vector.extract_strided_slice %321 {offsets = [0, 1], sizes = [16, 1], strides = [1, 1]} : vector<16x17xf32> to vector<16x1xf32>
    %328 = vector.extract_strided_slice %320 {offsets = [1, 0], sizes = [1, 2], strides = [1, 1]} : vector<16x2xf32> to vector<1x2xf32>
    %329 = vector.broadcast %327 : vector<16x1xf32> to vector<16x2xf32>
    %330 = vector.broadcast %328 : vector<1x2xf32> to vector<16x2xf32>
    %331 = arith.mulf %329, %330 : vector<16x2xf32>
    %332 = vector.extract_strided_slice %321 {offsets = [0, 2], sizes = [16, 1], strides = [1, 1]} : vector<16x17xf32> to vector<16x1xf32>
    %333 = vector.extract_strided_slice %320 {offsets = [2, 0], sizes = [1, 2], strides = [1, 1]} : vector<16x2xf32> to vector<1x2xf32>
    %334 = vector.broadcast %332 : vector<16x1xf32> to vector<16x2xf32>
    %335 = vector.broadcast %333 : vector<1x2xf32> to vector<16x2xf32>
    %336 = arith.mulf %334, %335 : vector<16x2xf32>
    %337 = vector.extract_strided_slice %321 {offsets = [0, 3], sizes = [16, 1], strides = [1, 1]} : vector<16x17xf32> to vector<16x1xf32>
    %338 = vector.extract_strided_slice %320 {offsets = [3, 0], sizes = [1, 2], strides = [1, 1]} : vector<16x2xf32> to vector<1x2xf32>
    %339 = vector.broadcast %337 : vector<16x1xf32> to vector<16x2xf32>
    %340 = vector.broadcast %338 : vector<1x2xf32> to vector<16x2xf32>
    %341 = arith.mulf %339, %340 : vector<16x2xf32>
    %342 = vector.extract_strided_slice %321 {offsets = [0, 4], sizes = [16, 1], strides = [1, 1]} : vector<16x17xf32> to vector<16x1xf32>
    %343 = vector.extract_strided_slice %320 {offsets = [4, 0], sizes = [1, 2], strides = [1, 1]} : vector<16x2xf32> to vector<1x2xf32>
    %344 = vector.broadcast %342 : vector<16x1xf32> to vector<16x2xf32>
    %345 = vector.broadcast %343 : vector<1x2xf32> to vector<16x2xf32>
    %346 = arith.mulf %344, %345 : vector<16x2xf32>
    %347 = vector.extract_strided_slice %321 {offsets = [0, 5], sizes = [16, 1], strides = [1, 1]} : vector<16x17xf32> to vector<16x1xf32>
    %348 = vector.extract_strided_slice %320 {offsets = [5, 0], sizes = [1, 2], strides = [1, 1]} : vector<16x2xf32> to vector<1x2xf32>
    %349 = vector.broadcast %347 : vector<16x1xf32> to vector<16x2xf32>
    %350 = vector.broadcast %348 : vector<1x2xf32> to vector<16x2xf32>
    %351 = arith.mulf %349, %350 : vector<16x2xf32>
    %352 = vector.extract_strided_slice %321 {offsets = [0, 6], sizes = [16, 1], strides = [1, 1]} : vector<16x17xf32> to vector<16x1xf32>
    %353 = vector.extract_strided_slice %320 {offsets = [6, 0], sizes = [1, 2], strides = [1, 1]} : vector<16x2xf32> to vector<1x2xf32>
    %354 = vector.broadcast %352 : vector<16x1xf32> to vector<16x2xf32>
    %355 = vector.broadcast %353 : vector<1x2xf32> to vector<16x2xf32>
    %356 = arith.mulf %354, %355 : vector<16x2xf32>
    %357 = vector.extract_strided_slice %321 {offsets = [0, 7], sizes = [16, 1], strides = [1, 1]} : vector<16x17xf32> to vector<16x1xf32>
    %358 = vector.extract_strided_slice %320 {offsets = [7, 0], sizes = [1, 2], strides = [1, 1]} : vector<16x2xf32> to vector<1x2xf32>
    %359 = vector.broadcast %357 : vector<16x1xf32> to vector<16x2xf32>
    %360 = vector.broadcast %358 : vector<1x2xf32> to vector<16x2xf32>
    %361 = arith.mulf %359, %360 : vector<16x2xf32>
    %362 = vector.extract_strided_slice %321 {offsets = [0, 8], sizes = [16, 1], strides = [1, 1]} : vector<16x17xf32> to vector<16x1xf32>
    %363 = vector.extract_strided_slice %320 {offsets = [8, 0], sizes = [1, 2], strides = [1, 1]} : vector<16x2xf32> to vector<1x2xf32>
    %364 = vector.broadcast %362 : vector<16x1xf32> to vector<16x2xf32>
    %365 = vector.broadcast %363 : vector<1x2xf32> to vector<16x2xf32>
    %366 = arith.mulf %364, %365 : vector<16x2xf32>
    %367 = vector.extract_strided_slice %321 {offsets = [0, 9], sizes = [16, 1], strides = [1, 1]} : vector<16x17xf32> to vector<16x1xf32>
    %368 = vector.extract_strided_slice %320 {offsets = [9, 0], sizes = [1, 2], strides = [1, 1]} : vector<16x2xf32> to vector<1x2xf32>
    %369 = vector.broadcast %367 : vector<16x1xf32> to vector<16x2xf32>
    %370 = vector.broadcast %368 : vector<1x2xf32> to vector<16x2xf32>
    %371 = arith.mulf %369, %370 : vector<16x2xf32>
    %372 = vector.extract_strided_slice %321 {offsets = [0, 10], sizes = [16, 1], strides = [1, 1]} : vector<16x17xf32> to vector<16x1xf32>
    %373 = vector.extract_strided_slice %320 {offsets = [10, 0], sizes = [1, 2], strides = [1, 1]} : vector<16x2xf32> to vector<1x2xf32>
    %374 = vector.broadcast %372 : vector<16x1xf32> to vector<16x2xf32>
    %375 = vector.broadcast %373 : vector<1x2xf32> to vector<16x2xf32>
    %376 = arith.mulf %374, %375 : vector<16x2xf32>
    %377 = vector.extract_strided_slice %321 {offsets = [0, 11], sizes = [16, 1], strides = [1, 1]} : vector<16x17xf32> to vector<16x1xf32>
    %378 = vector.extract_strided_slice %320 {offsets = [11, 0], sizes = [1, 2], strides = [1, 1]} : vector<16x2xf32> to vector<1x2xf32>
    %379 = vector.broadcast %377 : vector<16x1xf32> to vector<16x2xf32>
    %380 = vector.broadcast %378 : vector<1x2xf32> to vector<16x2xf32>
    %381 = arith.mulf %379, %380 : vector<16x2xf32>
    %382 = vector.extract_strided_slice %321 {offsets = [0, 12], sizes = [16, 1], strides = [1, 1]} : vector<16x17xf32> to vector<16x1xf32>
    %383 = vector.extract_strided_slice %320 {offsets = [12, 0], sizes = [1, 2], strides = [1, 1]} : vector<16x2xf32> to vector<1x2xf32>
    %384 = vector.broadcast %382 : vector<16x1xf32> to vector<16x2xf32>
    %385 = vector.broadcast %383 : vector<1x2xf32> to vector<16x2xf32>
    %386 = arith.mulf %384, %385 : vector<16x2xf32>
    %387 = vector.extract_strided_slice %321 {offsets = [0, 13], sizes = [16, 1], strides = [1, 1]} : vector<16x17xf32> to vector<16x1xf32>
    %388 = vector.extract_strided_slice %320 {offsets = [13, 0], sizes = [1, 2], strides = [1, 1]} : vector<16x2xf32> to vector<1x2xf32>
    %389 = vector.broadcast %387 : vector<16x1xf32> to vector<16x2xf32>
    %390 = vector.broadcast %388 : vector<1x2xf32> to vector<16x2xf32>
    %391 = arith.mulf %389, %390 : vector<16x2xf32>
    %392 = vector.extract_strided_slice %321 {offsets = [0, 14], sizes = [16, 1], strides = [1, 1]} : vector<16x17xf32> to vector<16x1xf32>
    %393 = vector.extract_strided_slice %320 {offsets = [14, 0], sizes = [1, 2], strides = [1, 1]} : vector<16x2xf32> to vector<1x2xf32>
    %394 = vector.broadcast %392 : vector<16x1xf32> to vector<16x2xf32>
    %395 = vector.broadcast %393 : vector<1x2xf32> to vector<16x2xf32>
    %396 = arith.mulf %394, %395 : vector<16x2xf32>
    %397 = vector.extract_strided_slice %321 {offsets = [0, 15], sizes = [16, 1], strides = [1, 1]} : vector<16x17xf32> to vector<16x1xf32>
    %398 = vector.extract_strided_slice %320 {offsets = [15, 0], sizes = [1, 2], strides = [1, 1]} : vector<16x2xf32> to vector<1x2xf32>
    %399 = vector.broadcast %397 : vector<16x1xf32> to vector<16x2xf32>
    %400 = vector.broadcast %398 : vector<1x2xf32> to vector<16x2xf32>
    %401 = arith.mulf %399, %400 : vector<16x2xf32>
    %402 = arith.addf %326, %331 : vector<16x2xf32>
    %403 = arith.addf %336, %341 : vector<16x2xf32>
    %404 = arith.addf %346, %351 : vector<16x2xf32>
    %405 = arith.addf %356, %361 : vector<16x2xf32>
    %406 = arith.addf %366, %371 : vector<16x2xf32>
    %407 = arith.addf %376, %381 : vector<16x2xf32>
    %408 = arith.addf %386, %391 : vector<16x2xf32>
    %409 = arith.addf %396, %401 : vector<16x2xf32>
    %410 = arith.addf %402, %403 : vector<16x2xf32>
    %411 = arith.addf %404, %405 : vector<16x2xf32>
    %412 = arith.addf %406, %407 : vector<16x2xf32>
    %413 = arith.addf %408, %409 : vector<16x2xf32>
    %414 = arith.addf %410, %411 : vector<16x2xf32>
    %415 = arith.addf %412, %413 : vector<16x2xf32>
    %416 = arith.addf %414, %415 : vector<16x2xf32>
    %417 = vector.extract_strided_slice %321 {offsets = [0, 16], sizes = [16, 1], strides = [1, 1]} : vector<16x17xf32> to vector<16x1xf32>
    %418 = vector.broadcast %417 : vector<16x1xf32> to vector<16x2xf32>
    %419 = arith.addf %416, %418 : vector<16x2xf32>
    %cst_25 = arith.constant 0.000000e+00 : f32
    %420 = vector.broadcast %cst_25 : f32 to vector<16x2xf32>
    %421 = arith.maximumf %419, %420 : vector<16x2xf32>
    %c136 = arith.constant 136 : index
    %c0_26 = arith.constant 0 : index
    %422 = vector.load %arg1[%c136, %c0_26] : memref<160x128xf32, #tpu.memory_space<vmem>>, vector<16x17xf32>
    %423 = vector.extract_strided_slice %422 {offsets = [0, 0], sizes = [16, 1], strides = [1, 1]} : vector<16x17xf32> to vector<16x1xf32>
    %424 = vector.extract_strided_slice %421 {offsets = [0, 0], sizes = [1, 2], strides = [1, 1]} : vector<16x2xf32> to vector<1x2xf32>
    %425 = vector.broadcast %423 : vector<16x1xf32> to vector<16x2xf32>
    %426 = vector.broadcast %424 : vector<1x2xf32> to vector<16x2xf32>
    %427 = arith.mulf %425, %426 : vector<16x2xf32>
    %428 = vector.extract_strided_slice %422 {offsets = [0, 1], sizes = [16, 1], strides = [1, 1]} : vector<16x17xf32> to vector<16x1xf32>
    %429 = vector.extract_strided_slice %421 {offsets = [1, 0], sizes = [1, 2], strides = [1, 1]} : vector<16x2xf32> to vector<1x2xf32>
    %430 = vector.broadcast %428 : vector<16x1xf32> to vector<16x2xf32>
    %431 = vector.broadcast %429 : vector<1x2xf32> to vector<16x2xf32>
    %432 = arith.mulf %430, %431 : vector<16x2xf32>
    %433 = vector.extract_strided_slice %422 {offsets = [0, 2], sizes = [16, 1], strides = [1, 1]} : vector<16x17xf32> to vector<16x1xf32>
    %434 = vector.extract_strided_slice %421 {offsets = [2, 0], sizes = [1, 2], strides = [1, 1]} : vector<16x2xf32> to vector<1x2xf32>
    %435 = vector.broadcast %433 : vector<16x1xf32> to vector<16x2xf32>
    %436 = vector.broadcast %434 : vector<1x2xf32> to vector<16x2xf32>
    %437 = arith.mulf %435, %436 : vector<16x2xf32>
    %438 = vector.extract_strided_slice %422 {offsets = [0, 3], sizes = [16, 1], strides = [1, 1]} : vector<16x17xf32> to vector<16x1xf32>
    %439 = vector.extract_strided_slice %421 {offsets = [3, 0], sizes = [1, 2], strides = [1, 1]} : vector<16x2xf32> to vector<1x2xf32>
    %440 = vector.broadcast %438 : vector<16x1xf32> to vector<16x2xf32>
    %441 = vector.broadcast %439 : vector<1x2xf32> to vector<16x2xf32>
    %442 = arith.mulf %440, %441 : vector<16x2xf32>
    %443 = vector.extract_strided_slice %422 {offsets = [0, 4], sizes = [16, 1], strides = [1, 1]} : vector<16x17xf32> to vector<16x1xf32>
    %444 = vector.extract_strided_slice %421 {offsets = [4, 0], sizes = [1, 2], strides = [1, 1]} : vector<16x2xf32> to vector<1x2xf32>
    %445 = vector.broadcast %443 : vector<16x1xf32> to vector<16x2xf32>
    %446 = vector.broadcast %444 : vector<1x2xf32> to vector<16x2xf32>
    %447 = arith.mulf %445, %446 : vector<16x2xf32>
    %448 = vector.extract_strided_slice %422 {offsets = [0, 5], sizes = [16, 1], strides = [1, 1]} : vector<16x17xf32> to vector<16x1xf32>
    %449 = vector.extract_strided_slice %421 {offsets = [5, 0], sizes = [1, 2], strides = [1, 1]} : vector<16x2xf32> to vector<1x2xf32>
    %450 = vector.broadcast %448 : vector<16x1xf32> to vector<16x2xf32>
    %451 = vector.broadcast %449 : vector<1x2xf32> to vector<16x2xf32>
    %452 = arith.mulf %450, %451 : vector<16x2xf32>
    %453 = vector.extract_strided_slice %422 {offsets = [0, 6], sizes = [16, 1], strides = [1, 1]} : vector<16x17xf32> to vector<16x1xf32>
    %454 = vector.extract_strided_slice %421 {offsets = [6, 0], sizes = [1, 2], strides = [1, 1]} : vector<16x2xf32> to vector<1x2xf32>
    %455 = vector.broadcast %453 : vector<16x1xf32> to vector<16x2xf32>
    %456 = vector.broadcast %454 : vector<1x2xf32> to vector<16x2xf32>
    %457 = arith.mulf %455, %456 : vector<16x2xf32>
    %458 = vector.extract_strided_slice %422 {offsets = [0, 7], sizes = [16, 1], strides = [1, 1]} : vector<16x17xf32> to vector<16x1xf32>
    %459 = vector.extract_strided_slice %421 {offsets = [7, 0], sizes = [1, 2], strides = [1, 1]} : vector<16x2xf32> to vector<1x2xf32>
    %460 = vector.broadcast %458 : vector<16x1xf32> to vector<16x2xf32>
    %461 = vector.broadcast %459 : vector<1x2xf32> to vector<16x2xf32>
    %462 = arith.mulf %460, %461 : vector<16x2xf32>
    %463 = vector.extract_strided_slice %422 {offsets = [0, 8], sizes = [16, 1], strides = [1, 1]} : vector<16x17xf32> to vector<16x1xf32>
    %464 = vector.extract_strided_slice %421 {offsets = [8, 0], sizes = [1, 2], strides = [1, 1]} : vector<16x2xf32> to vector<1x2xf32>
    %465 = vector.broadcast %463 : vector<16x1xf32> to vector<16x2xf32>
    %466 = vector.broadcast %464 : vector<1x2xf32> to vector<16x2xf32>
    %467 = arith.mulf %465, %466 : vector<16x2xf32>
    %468 = vector.extract_strided_slice %422 {offsets = [0, 9], sizes = [16, 1], strides = [1, 1]} : vector<16x17xf32> to vector<16x1xf32>
    %469 = vector.extract_strided_slice %421 {offsets = [9, 0], sizes = [1, 2], strides = [1, 1]} : vector<16x2xf32> to vector<1x2xf32>
    %470 = vector.broadcast %468 : vector<16x1xf32> to vector<16x2xf32>
    %471 = vector.broadcast %469 : vector<1x2xf32> to vector<16x2xf32>
    %472 = arith.mulf %470, %471 : vector<16x2xf32>
    %473 = vector.extract_strided_slice %422 {offsets = [0, 10], sizes = [16, 1], strides = [1, 1]} : vector<16x17xf32> to vector<16x1xf32>
    %474 = vector.extract_strided_slice %421 {offsets = [10, 0], sizes = [1, 2], strides = [1, 1]} : vector<16x2xf32> to vector<1x2xf32>
    %475 = vector.broadcast %473 : vector<16x1xf32> to vector<16x2xf32>
    %476 = vector.broadcast %474 : vector<1x2xf32> to vector<16x2xf32>
    %477 = arith.mulf %475, %476 : vector<16x2xf32>
    %478 = vector.extract_strided_slice %422 {offsets = [0, 11], sizes = [16, 1], strides = [1, 1]} : vector<16x17xf32> to vector<16x1xf32>
    %479 = vector.extract_strided_slice %421 {offsets = [11, 0], sizes = [1, 2], strides = [1, 1]} : vector<16x2xf32> to vector<1x2xf32>
    %480 = vector.broadcast %478 : vector<16x1xf32> to vector<16x2xf32>
    %481 = vector.broadcast %479 : vector<1x2xf32> to vector<16x2xf32>
    %482 = arith.mulf %480, %481 : vector<16x2xf32>
    %483 = vector.extract_strided_slice %422 {offsets = [0, 12], sizes = [16, 1], strides = [1, 1]} : vector<16x17xf32> to vector<16x1xf32>
    %484 = vector.extract_strided_slice %421 {offsets = [12, 0], sizes = [1, 2], strides = [1, 1]} : vector<16x2xf32> to vector<1x2xf32>
    %485 = vector.broadcast %483 : vector<16x1xf32> to vector<16x2xf32>
    %486 = vector.broadcast %484 : vector<1x2xf32> to vector<16x2xf32>
    %487 = arith.mulf %485, %486 : vector<16x2xf32>
    %488 = vector.extract_strided_slice %422 {offsets = [0, 13], sizes = [16, 1], strides = [1, 1]} : vector<16x17xf32> to vector<16x1xf32>
    %489 = vector.extract_strided_slice %421 {offsets = [13, 0], sizes = [1, 2], strides = [1, 1]} : vector<16x2xf32> to vector<1x2xf32>
    %490 = vector.broadcast %488 : vector<16x1xf32> to vector<16x2xf32>
    %491 = vector.broadcast %489 : vector<1x2xf32> to vector<16x2xf32>
    %492 = arith.mulf %490, %491 : vector<16x2xf32>
    %493 = vector.extract_strided_slice %422 {offsets = [0, 14], sizes = [16, 1], strides = [1, 1]} : vector<16x17xf32> to vector<16x1xf32>
    %494 = vector.extract_strided_slice %421 {offsets = [14, 0], sizes = [1, 2], strides = [1, 1]} : vector<16x2xf32> to vector<1x2xf32>
    %495 = vector.broadcast %493 : vector<16x1xf32> to vector<16x2xf32>
    %496 = vector.broadcast %494 : vector<1x2xf32> to vector<16x2xf32>
    %497 = arith.mulf %495, %496 : vector<16x2xf32>
    %498 = vector.extract_strided_slice %422 {offsets = [0, 15], sizes = [16, 1], strides = [1, 1]} : vector<16x17xf32> to vector<16x1xf32>
    %499 = vector.extract_strided_slice %421 {offsets = [15, 0], sizes = [1, 2], strides = [1, 1]} : vector<16x2xf32> to vector<1x2xf32>
    %500 = vector.broadcast %498 : vector<16x1xf32> to vector<16x2xf32>
    %501 = vector.broadcast %499 : vector<1x2xf32> to vector<16x2xf32>
    %502 = arith.mulf %500, %501 : vector<16x2xf32>
    %503 = arith.addf %427, %432 : vector<16x2xf32>
    %504 = arith.addf %437, %442 : vector<16x2xf32>
    %505 = arith.addf %447, %452 : vector<16x2xf32>
    %506 = arith.addf %457, %462 : vector<16x2xf32>
    %507 = arith.addf %467, %472 : vector<16x2xf32>
    %508 = arith.addf %477, %482 : vector<16x2xf32>
    %509 = arith.addf %487, %492 : vector<16x2xf32>
    %510 = arith.addf %497, %502 : vector<16x2xf32>
    %511 = arith.addf %503, %504 : vector<16x2xf32>
    %512 = arith.addf %505, %506 : vector<16x2xf32>
    %513 = arith.addf %507, %508 : vector<16x2xf32>
    %514 = arith.addf %509, %510 : vector<16x2xf32>
    %515 = arith.addf %511, %512 : vector<16x2xf32>
    %516 = arith.addf %513, %514 : vector<16x2xf32>
    %517 = arith.addf %515, %516 : vector<16x2xf32>
    %518 = vector.extract_strided_slice %422 {offsets = [0, 16], sizes = [16, 1], strides = [1, 1]} : vector<16x17xf32> to vector<16x1xf32>
    %519 = vector.broadcast %518 : vector<16x1xf32> to vector<16x2xf32>
    %520 = arith.addf %517, %519 : vector<16x2xf32>
    %cst_27 = arith.constant 0.000000e+00 : f32
    %521 = vector.broadcast %cst_27 : f32 to vector<16x2xf32>
    %522 = arith.maximumf %520, %521 : vector<16x2xf32>
    %c152 = arith.constant 152 : index
    %c0_28 = arith.constant 0 : index
    %523 = vector.load %arg1[%c152, %c0_28] : memref<160x128xf32, #tpu.memory_space<vmem>>, vector<1x17xf32>
    %524 = vector.extract_strided_slice %523 {offsets = [0, 0], sizes = [1, 1], strides = [1, 1]} : vector<1x17xf32> to vector<1x1xf32>
    %525 = vector.extract_strided_slice %522 {offsets = [0, 0], sizes = [1, 2], strides = [1, 1]} : vector<16x2xf32> to vector<1x2xf32>
    %526 = vector.broadcast %524 : vector<1x1xf32> to vector<1x2xf32>
    %527 = arith.mulf %526, %525 : vector<1x2xf32>
    %528 = vector.extract_strided_slice %523 {offsets = [0, 1], sizes = [1, 1], strides = [1, 1]} : vector<1x17xf32> to vector<1x1xf32>
    %529 = vector.extract_strided_slice %522 {offsets = [1, 0], sizes = [1, 2], strides = [1, 1]} : vector<16x2xf32> to vector<1x2xf32>
    %530 = vector.broadcast %528 : vector<1x1xf32> to vector<1x2xf32>
    %531 = arith.mulf %530, %529 : vector<1x2xf32>
    %532 = vector.extract_strided_slice %523 {offsets = [0, 2], sizes = [1, 1], strides = [1, 1]} : vector<1x17xf32> to vector<1x1xf32>
    %533 = vector.extract_strided_slice %522 {offsets = [2, 0], sizes = [1, 2], strides = [1, 1]} : vector<16x2xf32> to vector<1x2xf32>
    %534 = vector.broadcast %532 : vector<1x1xf32> to vector<1x2xf32>
    %535 = arith.mulf %534, %533 : vector<1x2xf32>
    %536 = vector.extract_strided_slice %523 {offsets = [0, 3], sizes = [1, 1], strides = [1, 1]} : vector<1x17xf32> to vector<1x1xf32>
    %537 = vector.extract_strided_slice %522 {offsets = [3, 0], sizes = [1, 2], strides = [1, 1]} : vector<16x2xf32> to vector<1x2xf32>
    %538 = vector.broadcast %536 : vector<1x1xf32> to vector<1x2xf32>
    %539 = arith.mulf %538, %537 : vector<1x2xf32>
    %540 = vector.extract_strided_slice %523 {offsets = [0, 4], sizes = [1, 1], strides = [1, 1]} : vector<1x17xf32> to vector<1x1xf32>
    %541 = vector.extract_strided_slice %522 {offsets = [4, 0], sizes = [1, 2], strides = [1, 1]} : vector<16x2xf32> to vector<1x2xf32>
    %542 = vector.broadcast %540 : vector<1x1xf32> to vector<1x2xf32>
    %543 = arith.mulf %542, %541 : vector<1x2xf32>
    %544 = vector.extract_strided_slice %523 {offsets = [0, 5], sizes = [1, 1], strides = [1, 1]} : vector<1x17xf32> to vector<1x1xf32>
    %545 = vector.extract_strided_slice %522 {offsets = [5, 0], sizes = [1, 2], strides = [1, 1]} : vector<16x2xf32> to vector<1x2xf32>
    %546 = vector.broadcast %544 : vector<1x1xf32> to vector<1x2xf32>
    %547 = arith.mulf %546, %545 : vector<1x2xf32>
    %548 = vector.extract_strided_slice %523 {offsets = [0, 6], sizes = [1, 1], strides = [1, 1]} : vector<1x17xf32> to vector<1x1xf32>
    %549 = vector.extract_strided_slice %522 {offsets = [6, 0], sizes = [1, 2], strides = [1, 1]} : vector<16x2xf32> to vector<1x2xf32>
    %550 = vector.broadcast %548 : vector<1x1xf32> to vector<1x2xf32>
    %551 = arith.mulf %550, %549 : vector<1x2xf32>
    %552 = vector.extract_strided_slice %523 {offsets = [0, 7], sizes = [1, 1], strides = [1, 1]} : vector<1x17xf32> to vector<1x1xf32>
    %553 = vector.extract_strided_slice %522 {offsets = [7, 0], sizes = [1, 2], strides = [1, 1]} : vector<16x2xf32> to vector<1x2xf32>
    %554 = vector.broadcast %552 : vector<1x1xf32> to vector<1x2xf32>
    %555 = arith.mulf %554, %553 : vector<1x2xf32>
    %556 = vector.extract_strided_slice %523 {offsets = [0, 8], sizes = [1, 1], strides = [1, 1]} : vector<1x17xf32> to vector<1x1xf32>
    %557 = vector.extract_strided_slice %522 {offsets = [8, 0], sizes = [1, 2], strides = [1, 1]} : vector<16x2xf32> to vector<1x2xf32>
    %558 = vector.broadcast %556 : vector<1x1xf32> to vector<1x2xf32>
    %559 = arith.mulf %558, %557 : vector<1x2xf32>
    %560 = vector.extract_strided_slice %523 {offsets = [0, 9], sizes = [1, 1], strides = [1, 1]} : vector<1x17xf32> to vector<1x1xf32>
    %561 = vector.extract_strided_slice %522 {offsets = [9, 0], sizes = [1, 2], strides = [1, 1]} : vector<16x2xf32> to vector<1x2xf32>
    %562 = vector.broadcast %560 : vector<1x1xf32> to vector<1x2xf32>
    %563 = arith.mulf %562, %561 : vector<1x2xf32>
    %564 = vector.extract_strided_slice %523 {offsets = [0, 10], sizes = [1, 1], strides = [1, 1]} : vector<1x17xf32> to vector<1x1xf32>
    %565 = vector.extract_strided_slice %522 {offsets = [10, 0], sizes = [1, 2], strides = [1, 1]} : vector<16x2xf32> to vector<1x2xf32>
    %566 = vector.broadcast %564 : vector<1x1xf32> to vector<1x2xf32>
    %567 = arith.mulf %566, %565 : vector<1x2xf32>
    %568 = vector.extract_strided_slice %523 {offsets = [0, 11], sizes = [1, 1], strides = [1, 1]} : vector<1x17xf32> to vector<1x1xf32>
    %569 = vector.extract_strided_slice %522 {offsets = [11, 0], sizes = [1, 2], strides = [1, 1]} : vector<16x2xf32> to vector<1x2xf32>
    %570 = vector.broadcast %568 : vector<1x1xf32> to vector<1x2xf32>
    %571 = arith.mulf %570, %569 : vector<1x2xf32>
    %572 = vector.extract_strided_slice %523 {offsets = [0, 12], sizes = [1, 1], strides = [1, 1]} : vector<1x17xf32> to vector<1x1xf32>
    %573 = vector.extract_strided_slice %522 {offsets = [12, 0], sizes = [1, 2], strides = [1, 1]} : vector<16x2xf32> to vector<1x2xf32>
    %574 = vector.broadcast %572 : vector<1x1xf32> to vector<1x2xf32>
    %575 = arith.mulf %574, %573 : vector<1x2xf32>
    %576 = vector.extract_strided_slice %523 {offsets = [0, 13], sizes = [1, 1], strides = [1, 1]} : vector<1x17xf32> to vector<1x1xf32>
    %577 = vector.extract_strided_slice %522 {offsets = [13, 0], sizes = [1, 2], strides = [1, 1]} : vector<16x2xf32> to vector<1x2xf32>
    %578 = vector.broadcast %576 : vector<1x1xf32> to vector<1x2xf32>
    %579 = arith.mulf %578, %577 : vector<1x2xf32>
    %580 = vector.extract_strided_slice %523 {offsets = [0, 14], sizes = [1, 1], strides = [1, 1]} : vector<1x17xf32> to vector<1x1xf32>
    %581 = vector.extract_strided_slice %522 {offsets = [14, 0], sizes = [1, 2], strides = [1, 1]} : vector<16x2xf32> to vector<1x2xf32>
    %582 = vector.broadcast %580 : vector<1x1xf32> to vector<1x2xf32>
    %583 = arith.mulf %582, %581 : vector<1x2xf32>
    %584 = vector.extract_strided_slice %523 {offsets = [0, 15], sizes = [1, 1], strides = [1, 1]} : vector<1x17xf32> to vector<1x1xf32>
    %585 = vector.extract_strided_slice %522 {offsets = [15, 0], sizes = [1, 2], strides = [1, 1]} : vector<16x2xf32> to vector<1x2xf32>
    %586 = vector.broadcast %584 : vector<1x1xf32> to vector<1x2xf32>
    %587 = arith.mulf %586, %585 : vector<1x2xf32>
    %588 = arith.addf %527, %531 : vector<1x2xf32>
    %589 = arith.addf %535, %539 : vector<1x2xf32>
    %590 = arith.addf %543, %547 : vector<1x2xf32>
    %591 = arith.addf %551, %555 : vector<1x2xf32>
    %592 = arith.addf %559, %563 : vector<1x2xf32>
    %593 = arith.addf %567, %571 : vector<1x2xf32>
    %594 = arith.addf %575, %579 : vector<1x2xf32>
    %595 = arith.addf %583, %587 : vector<1x2xf32>
    %596 = arith.addf %588, %589 : vector<1x2xf32>
    %597 = arith.addf %590, %591 : vector<1x2xf32>
    %598 = arith.addf %592, %593 : vector<1x2xf32>
    %599 = arith.addf %594, %595 : vector<1x2xf32>
    %600 = arith.addf %596, %597 : vector<1x2xf32>
    %601 = arith.addf %598, %599 : vector<1x2xf32>
    %602 = arith.addf %600, %601 : vector<1x2xf32>
    %603 = vector.extract_strided_slice %523 {offsets = [0, 16], sizes = [1, 1], strides = [1, 1]} : vector<1x17xf32> to vector<1x1xf32>
    %604 = vector.broadcast %603 : vector<1x1xf32> to vector<1x2xf32>
    %605 = arith.addf %602, %604 : vector<1x2xf32>
    %606 = arith.negf %605 : vector<1x2xf32>
    %607 = math.exp %606 : vector<1x2xf32>
    %cst_29 = arith.constant 1.000000e+00 : f32
    %608 = vector.broadcast %cst_29 : f32 to vector<1x2xf32>
    %609 = arith.addf %608, %607 : vector<1x2xf32>
    %610 = arith.divf %608, %609 : vector<1x2xf32>
    %c0_30 = arith.constant 0 : index
    %c0_31 = arith.constant 0 : index
    %611 = vector.load %arg2[%c0_30, %c0_31] : memref<1x2xf32, #tpu.memory_space<vmem>>, vector<1x2xf32>
    tpu.vector_store %arg2[%c0_30, %c0_31], %610 {strides = array<i32>} : memref<1x2xf32, #tpu.memory_space<vmem>>, vector<1x2xf32>,
    return
  }
}

</mosaic_0001>

<bundles_post_ra>
// kernel: forward.1
= control target key start
LH: loop header
LB: loop body
LE: loop exit
PB: predicated region body
PF: predicated region fallthrough
CT: control target
= control target key end

     0   :  { %v2521_v13 = vmov 2   ;;  %s2498_s0 = inlined_call_operand.vmem [shape: f32[4,72], index: 0, kind: input, shape index: {}]   ;;  %s2499_s1 = inlined_call_operand.vmem [shape: f32[160,128], index: 1, kind: input, shape index: {}]   ;;  %s2500_s2 = inlined_call_operand.hbm [shape: f32[1,2], index: 2, kind: output, shape index: {}]  }
   0x1   :  { %v12_v0 = vld [vmem:[%s2498_s0] sm:$0xf]  ;;  %v16_v2 = vld [vmem:[%s2499_s1 + $0x8] sm:$0x3]  ;;  %v19_v5 = vld [vmem:[%s2499_s1 + $0x10] sm:$0x3]  ;;  %1286 = vset.pattern.permute.xlu1 %v2521_v13 }
   0x2   :  { %v13_v1 = vld [vmem:[%s2499_s1] sm:$0x3]  ;;  %v14_v3 = vperm.slane %v12_v0, 0  ;;  %v17_v4 = vperm.slane %v12_v0, 1  ;;  %v20_v6 = vperm.slane %v12_v0, 2  ;;  %v23_v7 = vperm.slane %v12_v0, 3 }
   0x3   :  { %v22_v8 = vld [vmem:[%s2499_s1 + $0x18] sm:$0x3] }
   0x4   :  { %v15_v9 = vmul.f32 %v14_v3, %v13_v1  ;;  %v18_v10 = vmul.f32 %v17_v4, %v16_v2  ;;  %v21_v11 = vmul.f32 %v20_v6, %v19_v5  ;;  %v24_v12 = vmul.f32 %v23_v7, %v22_v8 }
   0x5   :  { %7 = vsyncpa [#allocation3], 0  ;;  %v2519_v14 = vmov 0   ;;  %s1470_s0 = smov 74   ;;  %s1471_s19 = smov 92   ;;  %v1561_v23 = vld [vmem:[%s2499_s1 + $0x70] sm:$0xff] }
   0x6   :  { %1282 = vset.pattern.permute.xlu2 %v2519_v14  ;;  %v25_v15 = vadd.f32 %v18_v10, %v15_v9  ;;  %v26_v16 = vadd.f32 %v24_v12, %v21_v11  ;;  %s1472_s20 = smov 110   ;;  %v76_v22 = vld [vmem:[%s2499_s1 + $0x60] sm:$0xf]  ;;  %v2533_v24 = vmov 6   ;;  %v2523_v25 = vmov 1   ;;  %v1572_v27 = vld [vmem:[%s2499_s1 + $0x68] sm:$0xff] }
   0x7   :  { %1293 = vset.pattern.permute.xlu0 %v2533_v24  ;;  %v2529_v26 = vmov 4   ;;  %v2515_v28 = vmov 9   ;;  %v2531_v29 = vmov 5   ;;  %v2509_v30 = vmov 11   ;;  %v59_v47 = vld [vmem:[%s2499_s1 + $0x50] sm:$0xf] }
   0x8   :  { %v27_v17 = vadd.f32 %v26_v16, %v25_v15  ;;  %v2527_v31 = vmov 7   ;;  %v2505_v32 = vmov 14   ;;  %v2517_v33 = vmov 8   ;;  %v64_v48 = vld [vmem:[%s2499_s1 + $0x58] sm:$0xf]  ;;  %s1509_s21 = smov 112  }
   0x9   :  { %v2501_v34 = vmov 16   ;;  %v2525_v35 = vmov 3   ;;  %v2511_v36 = vmov 10   ;;  %v2513_v37 = vmov 12   ;;  %v31_v49 = vld [vmem:[%s2499_s1 + $0x20] sm:$0xf] }
   0xa   :  { %vm28_vm0 = vcmp.ge.f32.partialorder %v27_v17, 0.0  ;;  %v29_v18 = vmul.f32 0.2, %v27_v17  ;;  %v2507_v38 = vmov 13   ;;  %v1487_v40 = vmov 19   ;;  %s1510_s24 = smov 124  }
   0xb   :  { %v2503_v42 = vmov 15   ;;  %v1489_v44 = vmov 17   ;;  %v34_v50 = vld [vmem:[%s2499_s1 + $0x28] sm:$0xf]  ;;  %v37_v53 = vld [vmem:[%s2499_s1 + $0x30] sm:$0xf] }
   0xc   :  { %v30_v19 = vsel %vm28_vm0, %v27_v17, %v29_v18  ;;  %v49_v55 = vld [vmem:[%s2499_s1 + $0x40] sm:$0xf]  ;;  %v54_v56 = vld [vmem:[%s2499_s1 + $0x48] sm:$0xf]  ;;  %v43_v59 = vld [vmem:[%s2499_s1 + $0x38] sm:$0xf] }
   0xd   :  { %v1545_v20 = vperm.slane %v30_v19, 0  ;;  %v1550_v21 = vperm.slane %v30_v19, 1  ;;  %v1490_v2 = vmov 18   ;;  %vm77_vm1 = vcmask 142336   ;;  %s1512_s29 = smov [#allocation2]   ;;  %s1227_s5 = sshll.u32 %s2500_s2, 4  ;;  %s1228_s5 = int_to_ptr.hbm [resolvable:$true] %s1227_s5 }
   0xe   :  { %v1491_v15 = vmov 20   ;;  %v1492_v18 = vmov 22   ;;  %s1225_s30 = sshll.u32 %s1512_s29, 4  ;;  %vm1218_vm10 = vcmask 8192   ;;  %s1226_s30 = int_to_ptr.vmem [resolvable:$true] %s1225_s30 }
   0xf   :  { %60 = vrot.lane.b32.xlu2 %v1545_v20, %s1470_s0  ;;  %50 = vrot.lane.b32.xlu1 %v1545_v20, %s1471_s19  ;;  %v33_v57 = vmul.f32 %v1545_v20, %v31_v49  ;;  %v36_v58 = vmul.f32 %v1550_v21, %v34_v50  ;;  %v1497_v50 = vmov 27  }
  0x10   :  { %39 = vrot.lane.b32.xlu0 %v1545_v20, %s1472_s20 }
  0x11   :  { %v69_v4 = vadd.f32 %v36_v58, %v33_v57  ;;  %v1499_v58 = vmov 29  }
  0x17   :  { %65 = vrot.lane.b32.xlu2 %v1550_v21, %s1470_s0  ;;  %55 = vrot.lane.b32.xlu1 %v1550_v21, %s1471_s19  ;;  %s1508_s0 = smov 126  }
  0x18   :  { %45 = vrot.lane.b32.xlu0 %v1550_v21, %s1472_s20  ;;  %v1493_v21 = vmov 23  }
  0x1f   :  { %97 = vperm.xlu2 %1282, %v76_v22   ;;  %152 = vperm.xlu1 %1286, %v1561_v23  }
  0x20   :  { %194 = vperm.xlu0 %1293, %v1561_v23  }
  0x27   :  { %1283 = vset.pattern.permute.xlu2 %v2523_v25  ;;  %1289 = vset.pattern.permute.xlu1 %v2529_v26 }
  0x28   :  { %114 = vperm.xlu2 %1283, %v76_v22   ;;  %174 = vperm.xlu1 %1289, %v1561_v23  }
  0x29   :  { %1298 = vset.pattern.permute.xlu0 %v2515_v28 }
  0x2a   :  { %220 = vperm.xlu0 %1298, %v1572_v27  }
  0x30   :  { %1284 = vset.pattern.permute.xlu2 %v2519_v14  ;;  %1291 = vset.pattern.permute.xlu1 %v2531_v29 }
  0x31   :  { %125 = vperm.xlu2 %1284, %v1572_v27   ;;  %184 = vperm.xlu1 %1291, %v1561_v23  }
  0x32   :  { %1303 = vset.pattern.permute.xlu0 %v2509_v30 }
  0x33   :  { %244 = vperm.xlu0 %1303, %v1561_v23  }
  0x39   :  { %130 = vperm.xlu2 %1284, %v1561_v23   ;;  %1294 = vset.pattern.permute.xlu1 %v2527_v31 }
  0x3a   :  { %200 = vperm.xlu1 %1294, %v1572_v27  }
  0x3b   :  { %1308 = vset.pattern.permute.xlu0 %v2505_v32 }
  0x3c   :  { %270 = vperm.xlu0 %1308, %v1572_v27  }
  0x41   :  { %1285 = vset.pattern.permute.xlu2 %v2523_v25 }
  0x42   :  { %137 = vperm.xlu2 %1285, %v1572_v27   ;;  %1296 = vset.pattern.permute.xlu1 %v2517_v33 }
  0x43   :  { %210 = vperm.xlu1 %1296, %v1572_v27  }
  0x44   :  { %1313 = vset.pattern.permute.xlu0 %v2501_v34 }
  0x45   :  { %294 = vperm.xlu0 %1313, %v1561_v23  }
  0x4a   :  { %141 = vperm.xlu2 %1285, %v1561_v23  }
  0x4b   :  { %1299 = vset.pattern.permute.xlu1 %v2515_v28 }
  0x4c   :  { %224 = vperm.xlu1 %1299, %v1561_v23  }
  0x4d   :  { %1318 = vset.pattern.permute.xlu0 %v1487_v40 }
  0x52   :  { %1287 = vset.pattern.permute.xlu2 %v2525_v35 }
  0x53   :  { %159 = vperm.xlu2 %1287, %v1572_v27  }
  0x54   :  { %1301 = vset.pattern.permute.xlu1 %v2511_v36 }
  0x55   :  { %234 = vperm.xlu1 %1301, %v1561_v23  }
  0x5b   :  { %163 = vperm.xlu2 %1287, %v1561_v23  }
  0x5d   :  { %1304 = vset.pattern.permute.xlu1 %v2513_v37 }
  0x5e   :  { %250 = vperm.xlu1 %1304, %v1572_v27  }
  0x63   :  { %1288 = vset.pattern.permute.xlu2 %v2529_v26 }
  0x64   :  { %170 = vperm.xlu2 %1288, %v1572_v27  }
  0x66   :  { %1306 = vset.pattern.permute.xlu1 %v2507_v38 }
  0x67   :  { %260 = vperm.xlu1 %1306, %v1572_v27  }
  0x69   :  { %v61_v39 = vpop.permute.xlu2 %60 }
  0x6a   :  { %v63_v52 = vmul.f32 %v61_v39, %v59_v47  ;;  %v1496_v47 = vmov 25  }
  0x6c   :  { %1290 = vset.pattern.permute.xlu2 %v2531_v29 }
  0x6d   :  { %180 = vperm.xlu2 %1290, %v1572_v27  }
  0x6f   :  { %1309 = vset.pattern.permute.xlu1 %v2505_v32  ;;  %v1505_v32 = vmov 33  }
  0x70   :  { %274 = vperm.xlu1 %1309, %v1561_v23  }
  0x71   :  { %v66_v41 = vpop.permute.xlu2 %65 }
  0x72   :  { %v68_v54 = vmul.f32 %v66_v41, %v64_v48 }
  0x74   :  { %v72_v63 = vadd.f32 %v68_v54, %v63_v52  ;;  %v1498_v54 = vmov 28  }
  0x75   :  { %1292 = vset.pattern.permute.xlu2 %v2533_v24 }
  0x76   :  { %190 = vperm.xlu2 %1292, %v1572_v27  }
  0x78   :  { %1311 = vset.pattern.permute.xlu1 %v2503_v42 }
  0x79   :  { %284 = vperm.xlu1 %1311, %v1561_v23   ;;  %v1615_v43 = vpop.permute.xlu2 %97 }
  0x7e   :  { %1295 = vset.pattern.permute.xlu2 %v2527_v31 }
  0x7f   :  { %204 = vperm.xlu2 %1295, %v1561_v23  }
  0x81   :  { %1314 = vset.pattern.permute.xlu1 %v1489_v44  ;;  %v51_v45 = vpop.permute.xlu1 %50 }
  0x82   :  { %v40_v46 = vpop.permute.xlu0 %39  ;;  %300 = vperm.xlu1 %1314, %v1572_v27   ;;  %v1633_v51 = vpop.permute.xlu2 %114  ;;  %v53_v62 = vmul.f32 %v51_v45, %v49_v55 }
  0x83   :  { %v42_v60 = vmul.f32 %v40_v46, %v37_v53  ;;  %v1495_v46 = vmov 21  }
  0x87   :  { %1297 = vset.pattern.permute.xlu2 %v2517_v33 }
  0x88   :  { %214 = vperm.xlu2 %1297, %v1561_v23  }
  0x89   :  { %v56_v61 = vpop.permute.xlu1 %55 }
  0x8a   :  { %v58_v0 = vmul.f32 %v56_v61, %v54_v56  ;;  %v46_v1 = vpop.permute.xlu0 %45  ;;  %1316 = vset.pattern.permute.xlu1 %v1490_v2 }
  0x8b   :  { %v48_v3 = vmul.f32 %v46_v1, %v43_v59  ;;  %310 = vperm.xlu1 %1316, %v1572_v27   ;;  %v1653_v6 = vpop.permute.xlu2 %125  ;;  %v1500_v59 = vmov 26  }
  0x8c   :  { %v71_v5 = vadd.f32 %v58_v0, %v53_v62  ;;  %2539 = vst [vmem:[#allocation5_spill] sm:$0xff] %v1653_v6  ;;  %v2558_v6 = vmov 8  }
  0x8d   :  { %v70_v7 = vadd.f32 %v48_v3, %v42_v60  ;;  %v1502_v3 = vmov 32  }
  0x8e   :  { %v74_v8 = vadd.f32 %v72_v63, %v71_v5  ;;  %v1501_v63 = vmov 30  }
  0x8f   :  { %v73_v9 = vadd.f32 %v70_v7, %v69_v4  ;;  %v1503_v4 = vmov 18.0  }
  0x90   :  { %1300 = vset.pattern.permute.xlu2 %v2511_v36  ;;  %1433 = vrcp.f32 %v1503_v4 }
  0x91   :  { %230 = vperm.xlu2 %1300, %v1572_v27   ;;  %v1657_v10 = vadd.f32 %v74_v8, %v73_v9  ;;  %v1666_v16 = vpop.permute.xlu1 %152 }
  0x92   :  { %v1718_v55 = vpop.permute.xlu0 %194 }
  0x93   :  { %1319 = vset.pattern.permute.xlu1 %v1487_v40  ;;  %v78_v11 = vsel %vm77_vm1, %v1657_v10, 0.0  ;;  %v1662_v12 = vpop.permute.xlu2 %130  ;;  %v1494_v40 = vmov 24  }
  0x94   :  { %79 = vadd.xlane.f32.xlu0 %v78_v11  ;;  %324 = vperm.xlu1 %1319, %v1561_v23  }
  0x96   :  { %v1434_v7 = vpop.eup %1433 }
  0x97   :  { %v82_v11 = vmul.f32 18.0, %v1434_v7  ;;  %vm86_vm2 = vweird.f32 %v1434_v7 }
  0x99   :  { %1302 = vset.pattern.permute.xlu2 %v2509_v30 }
  0x9a   :  { %240 = vperm.xlu2 %1302, %v1572_v27   ;;  %v1677_v20 = vpop.permute.xlu1 %174 }
  0x9c   :  { %1321 = vset.pattern.permute.xlu1 %v1491_v15  ;;  %v1669_v17 = vpop.permute.xlu2 %137  ;;  %v1727_v60 = vpop.permute.xlu0 %220 }
  0x9d   :  { %334 = vperm.xlu1 %1321, %v1561_v23   ;;  %2540 = vst [vmem:[#allocation6_spill] sm:$0xff] %v1669_v17 }
  0x9e   :  { %2544 = vst [vmem:[#allocation10_spill] sm:$0xff] %v1727_v60 }
  0xa2   :  { %1305 = vset.pattern.permute.xlu2 %v2513_v37 }
  0xa3   :  { %254 = vperm.xlu2 %1305, %v1561_v23   ;;  %v1686_v39 = vpop.permute.xlu1 %184 }
  0xa4   :  { %v1675_v19 = vpop.permute.xlu2 %141 }
  0xa5   :  { %1324 = vset.pattern.permute.xlu1 %v1492_v18  ;;  %v1740_v1 = vpop.permute.xlu0 %244 }
  0xa6   :  { %350 = vperm.xlu1 %1324, %v1572_v27  }
  0xa8   :  { %320 = vperm.xlu0 %1318, %v1572_v27  }
  0xab   :  { %1307 = vset.pattern.permute.xlu2 %v2507_v38 }
  0xac   :  { %264 = vperm.xlu2 %1307, %v1561_v23   ;;  %v1693_v45 = vpop.permute.xlu1 %200 }
  0xad   :  { %v1684_v22 = vpop.permute.xlu2 %159 }
  0xae   :  { %1326 = vset.pattern.permute.xlu1 %v1493_v21  ;;  %2541 = vst [vmem:[#allocation7_spill] sm:$0xff] %v1684_v22  ;;  %v1749_v8 = vpop.permute.xlu0 %270  ;;  %v2557_v22 = vmov 7  }
  0xaf   :  { %360 = vperm.xlu1 %1326, %v1572_v27  }
  0xb0   :  { %1323 = vset.pattern.permute.xlu0 %v1495_v46 }
  0xb1   :  { %344 = vperm.xlu0 %1323, %v1561_v23  }
  0xb4   :  { %1310 = vset.pattern.permute.xlu2 %v2503_v42 }
  0xb5   :  { %280 = vperm.xlu2 %1310, %v1572_v27   ;;  %v1691_v41 = vpop.permute.xlu2 %163  ;;  %v1701_v49 = vpop.permute.xlu1 %210 }
  0xb6   :  { %2542 = vst [vmem:[#allocation8_spill] sm:$0xff] %v1691_v41 }
  0xb7   :  { %1329 = vset.pattern.permute.xlu1 %v1494_v40  ;;  %2543 = vst [vmem:[#allocation9_spill] sm:$0xff] %v1701_v49 }
  0xb8   :  { %374 = vperm.xlu1 %1329, %v1561_v23  }
  0xb9   :  { %1328 = vset.pattern.permute.xlu0 %v1494_v40  ;;  %v1756_v40 = vpop.permute.xlu0 %294 }
  0xba   :  { %370 = vperm.xlu0 %1328, %v1572_v27   ;;  %2547 = vst [vmem:[#allocation13_spill] sm:$0xff] %v1756_v40 }
  0xbd   :  { %1312 = vset.pattern.permute.xlu2 %v2501_v34 }
  0xbe   :  { %290 = vperm.xlu2 %1312, %v1572_v27   ;;  %v1699_v48 = vpop.permute.xlu2 %170  ;;  %v1710_v53 = vpop.permute.xlu1 %224 }
  0xc0   :  { %1331 = vset.pattern.permute.xlu1 %v1496_v47 }
  0xc1   :  { %384 = vperm.xlu1 %1331, %v1561_v23  }
  0xc2   :  { %1333 = vset.pattern.permute.xlu0 %v1500_v59 }
  0xc3   :  { %394 = vperm.xlu0 %1333, %v1561_v23  }
  0xc6   :  { %1315 = vset.pattern.permute.xlu2 %v1489_v44 }
  0xc7   :  { %304 = vperm.xlu2 %1315, %v1561_v23   ;;  %v1708_v52 = vpop.permute.xlu2 %180  ;;  %v1720_v56 = vpop.permute.xlu1 %234 }
  0xc9   :  { %1334 = vset.pattern.permute.xlu1 %v1497_v50 }
  0xca   :  { %400 = vperm.xlu1 %1334, %v1572_v27  }
  0xcb   :  { %1338 = vset.pattern.permute.xlu0 %v1499_v58 }
  0xcc   :  { %420 = vperm.xlu0 %1338, %v1572_v27  }
  0xcf   :  { %1317 = vset.pattern.permute.xlu2 %v1490_v2 }
  0xd0   :  { %314 = vperm.xlu2 %1317, %v1561_v23   ;;  %v1715_v44 = vpop.permute.xlu2 %190  ;;  %v1732_v62 = vpop.permute.xlu1 %250 }
  0xd2   :  { %1336 = vset.pattern.permute.xlu1 %v1498_v54 }
  0xd3   :  { %410 = vperm.xlu1 %1336, %v1572_v27  }
  0xd8   :  { %1320 = vset.pattern.permute.xlu2 %v1491_v15  ;;  %v83_v15 = vsub.f32 1.0, %v82_v11 }
  0xd9   :  { %330 = vperm.xlu2 %1320, %v1572_v27   ;;  %v1723_v57 = vpop.permute.xlu2 %204  ;;  %v1742_v2 = vpop.permute.xlu1 %260 }
  0xdb   :  { %1339 = vset.pattern.permute.xlu1 %v1499_v58  ;;  %v1504_v58 = vmov 31  }
  0xdc   :  { %424 = vperm.xlu1 %1339, %v1561_v23   ;;  %1343 = vset.pattern.permute.xlu0 %v1504_v58 }
  0xdd   :  { %444 = vperm.xlu0 %1343, %v1561_v23  }
  0xe1   :  { %1322 = vset.pattern.permute.xlu2 %v1495_v46  ;;  %v84_v46 = vmul.f32 %v1434_v7, %v83_v15 }
  0xe2   :  { %340 = vperm.xlu2 %1322, %v1572_v27   ;;  %v1730_v61 = vpop.permute.xlu2 %214  ;;  %v1751_v9 = vpop.permute.xlu1 %274 }
  0xe3   :  { %v85_v4 = vadd.f32 %v1434_v7, %v84_v46  ;;  %v1506_v46 = vmov 34  }
  0xe4   :  { %1341 = vset.pattern.permute.xlu1 %v1501_v63 }
  0xe5   :  { %434 = vperm.xlu1 %1341, %v1561_v23   ;;  %v1764_v11 = vsel %vm86_vm2, %v1434_v7, %v85_v4  ;;  %1348 = vset.pattern.permute.xlu0 %v1506_v46 }
  0xe6   :  { %470 = vperm.xlu0 %1348, %v1572_v27  }
  0xea   :  { %1325 = vset.pattern.permute.xlu2 %v1492_v18 }
  0xeb   :  { %354 = vperm.xlu2 %1325, %v1561_v23   ;;  %v1738_v0 = vpop.permute.xlu2 %230 }
  0xec   :  { %2545 = vst [vmem:[#allocation11_spill] sm:$0xff] %v1738_v0  ;;  %v2562_v0 = vmov 11  }
  0xed   :  { %1344 = vset.pattern.permute.xlu1 %v1502_v3 }
  0xee   :  { %450 = vperm.xlu1 %1344, %v1572_v27   ;;  %1364 = vset.pattern.permute.xlu0 %v2527_v31 }
  0xf3   :  { %1327 = vset.pattern.permute.xlu2 %v1493_v21  ;;  %v1758_v21 = vpop.permute.xlu1 %284 }
  0xf4   :  { %364 = vperm.xlu2 %1327, %v1561_v23   ;;  %v1747_v5 = vpop.permute.xlu2 %240 }
  0xf5   :  { %2546 = vst [vmem:[#allocation12_spill] sm:$0xff] %v1747_v5  ;;  %v2561_v5 = vmov 10  }
  0xf6   :  { %1346 = vset.pattern.permute.xlu1 %v1505_v32 }
  0xfb   :  { %v1766_v42 = vpop.permute.xlu1 %300 }
  0xfc   :  { %1330 = vset.pattern.permute.xlu2 %v1496_v47  ;;  %2548 = vst [vmem:[#allocation14_spill] sm:$0xff] %v1766_v42 }
  0xfd   :  { %380 = vperm.xlu2 %1330, %v1572_v27   ;;  %v1754_v18 = vpop.permute.xlu2 %254 }
 0x103   :  { %v1778_v4 = vpop.permute.xlu1 %310 }
 0x104   :  { %2549 = vst [vmem:[#allocation15_spill] sm:$0xff] %v1778_v4 }
 0x105   :  { %1332 = vset.pattern.permute.xlu2 %v1500_v59 }
 0x106   :  { %390 = vperm.xlu2 %1332, %v1572_v27   ;;  %v1762_v47 = vpop.permute.xlu2 %264 }
 0x107   :  { %v80_v34 = vpop.xlane.xlu0 %79 }
 0x108   :  { %v88_v15 = vmul.f32 %v1764_v11, %v80_v34 }
 0x10a   :  { %v1771_v38 = vsub.f32 %v1657_v10, %v88_v15 }
 0x10c   :  { %v90_v7 = vmul.f32 %v1771_v38, %v1771_v38 }
 0x10e   :  { %1335 = vset.pattern.permute.xlu2 %v1497_v50  ;;  %v91_v34 = vsel %vm77_vm1, %v90_v7, 0.0  ;;  %v1787_v50 = vpop.permute.xlu1 %324  ;;  %v1800_v7 = vld [vmem:[%s2499_s1 + $0x80] sm:$0xff] }
 0x10f   :  { %404 = vperm.xlu2 %1335, %v1561_v23   ;;  %v1774_v59 = vpop.permute.xlu2 %280  ;;  %2551 = vst [vmem:[#allocation17_spill] sm:$0xff] %v1787_v50  ;;  %709 = vperm.xlu0 %1364, %v1800_v7  }
 0x116   :  { %v1792_v30 = vpop.permute.xlu1 %334 }
 0x117   :  { %1337 = vset.pattern.permute.xlu2 %v1498_v54  ;;  %1373 = vset.pattern.permute.xlu0 %v2513_v37  ;;  %v1507_v37 = vmov 35  }
 0x118   :  { %414 = vperm.xlu2 %1337, %v1561_v23   ;;  %92 = vadd.xlane.f32.xlu1 %v91_v34  ;;  %v1784_v10 = vpop.permute.xlu2 %290 }
 0x119   :  { %2550 = vst [vmem:[#allocation16_spill] sm:$0xff] %v1784_v10  ;;  %764 = vperm.xlu0 %1373, %v1800_v7  }
 0x11a   :  { %v1868_v31 = vpop.permute.xlu0 %320 }
 0x11b   :  { %2556 = vst [vmem:[#allocation22_spill] sm:$0xff] %v1868_v31 }
 0x120   :  { %1340 = vset.pattern.permute.xlu2 %v1501_v63  ;;  %v1804_v63 = vpop.permute.xlu1 %350 }
 0x121   :  { %430 = vperm.xlu2 %1340, %v1572_v27   ;;  %v1790_v15 = vpop.permute.xlu2 %304  ;;  %1374 = vset.pattern.permute.xlu0 %v2519_v14 }
 0x122   :  { %2552 = vst [vmem:[#allocation18_spill] sm:$0xff] %v1790_v15  ;;  %v2559_v15 = vmov 9  }
 0x123   :  { %v1876_v17 = vpop.permute.xlu0 %344 }
 0x128   :  { %v1815_v36 = vpop.permute.xlu1 %360 }
 0x129   :  { %1342 = vset.pattern.permute.xlu2 %v1504_v58 }
 0x12a   :  { %440 = vperm.xlu2 %1342, %v1572_v27   ;;  %v1795_v54 = vpop.permute.xlu2 %314 }
 0x12b   :  { %2553 = vst [vmem:[#allocation19_spill] sm:$0xff] %v1795_v54 }
 0x12c   :  { %v1884_v54 = vpop.permute.xlu0 %370 }
 0x131   :  { %460 = vperm.xlu1 %1346, %v1572_v27  }
 0x132   :  { %1345 = vset.pattern.permute.xlu2 %v1502_v3  ;;  %v1820_v3 = vld [vmem:[%s2499_s1 + $0x78] sm:$0xff] }
 0x133   :  { %454 = vperm.xlu2 %1345, %v1561_v23   ;;  %v1807_v34 = vpop.permute.xlu2 %330  ;;  %627 = vperm.xlu0 %1374, %v1820_v3  }
 0x139   :  { %1349 = vset.pattern.permute.xlu1 %v1506_v46  ;;  %v1828_v46 = vpop.permute.xlu1 %374 }
 0x13a   :  { %474 = vperm.xlu1 %1349, %v1561_v23   ;;  %2554 = vst [vmem:[#allocation20_spill] sm:$0xff] %v1828_v46 }
 0x13b   :  { %1347 = vset.pattern.permute.xlu2 %v1505_v32 }
 0x13c   :  { %464 = vperm.xlu2 %1347, %v1561_v23   ;;  %v1813_v58 = vpop.permute.xlu2 %340 }
 0x141   :  { %v1836_v33 = vpop.permute.xlu1 %384 }
 0x142   :  { %1351 = vset.pattern.permute.xlu1 %v1507_v37  ;;  %2555 = vst [vmem:[#allocation21_spill] sm:$0xff] %v1836_v33 }
 0x143   :  { %484 = vperm.xlu1 %1351, %v1561_v23  }
 0x144   :  { %1350 = vset.pattern.permute.xlu2 %v1507_v37 }
 0x145   :  { %480 = vperm.xlu2 %1350, %v1572_v27   ;;  %v1826_v32 = vpop.permute.xlu2 %354 }
 0x149   :  { %v1844_v27 = vpop.permute.xlu1 %400 }
 0x14b   :  { %1352 = vset.pattern.permute.xlu1 %v2519_v14 }
 0x14c   :  { %632 = vperm.xlu1 %1352, %v1800_v7  }
 0x14d   :  { %1353 = vset.pattern.permute.xlu2 %v2523_v25 }
 0x14e   :  { %639 = vperm.xlu2 %1353, %v1820_v3   ;;  %v1834_v28 = vpop.permute.xlu2 %364 }
 0x151   :  { %v1852_v14 = vpop.permute.xlu1 %410 }
 0x154   :  { %1354 = vset.pattern.permute.xlu1 %v2523_v25 }
 0x155   :  { %643 = vperm.xlu1 %1354, %v1800_v7  }
 0x156   :  { %1355 = vset.pattern.permute.xlu2 %v2521_v13 }
 0x157   :  { %650 = vperm.xlu2 %1355, %v1820_v3   ;;  %v1842_v23 = vpop.permute.xlu2 %380 }
 0x159   :  { %v1860_v25 = vpop.permute.xlu1 %424 }
 0x15d   :  { %1356 = vset.pattern.permute.xlu1 %v2525_v35 }
 0x15e   :  { %661 = vperm.xlu1 %1356, %v1820_v3  }
 0x15f   :  { %1357 = vset.pattern.permute.xlu2 %v2525_v35 }
 0x160   :  { %665 = vperm.xlu2 %1357, %v1800_v7   ;;  %v1850_v37 = vpop.permute.xlu2 %390 }
 0x166   :  { %1358 = vset.pattern.permute.xlu1 %v2529_v26 }
 0x167   :  { %672 = vperm.xlu1 %1358, %v1820_v3  }
 0x168   :  { %1359 = vset.pattern.permute.xlu2 %v2529_v26  ;;  %v1871_v26 = vpop.permute.xlu1 %434 }
 0x169   :  { %676 = vperm.xlu2 %1359, %v1800_v7   ;;  %v1858_v13 = vpop.permute.xlu2 %404 }
 0x16f   :  { %1360 = vset.pattern.permute.xlu1 %v2531_v29 }
 0x170   :  { %687 = vperm.xlu1 %1360, %v1800_v7   ;;  %v1880_v50 = vpop.permute.xlu1 %450 }
 0x171   :  { %1361 = vset.pattern.permute.xlu2 %v2533_v24 }
 0x172   :  { %694 = vperm.xlu2 %1361, %v1820_v3   ;;  %v1866_v35 = vpop.permute.xlu2 %414 }
 0x178   :  { %1362 = vset.pattern.permute.xlu1 %v2533_v24 }
 0x179   :  { %698 = vperm.xlu1 %1362, %v1800_v7  }
 0x17a   :  { %1363 = vset.pattern.permute.xlu2 %v2557_v22 }
 0x17b   :  { %705 = vperm.xlu2 %1363, %v1820_v3   ;;  %v431_v29 = vpop.permute.xlu2 %430 }
 0x181   :  { %1365 = vset.pattern.permute.xlu1 %v2558_v6 }
 0x182   :  { %716 = vperm.xlu1 %1365, %v1820_v3  }
 0x183   :  { %1366 = vset.pattern.permute.xlu2 %v2558_v6  ;;  %v395_v6 = vpop.permute.xlu0 %394 }
 0x184   :  { %720 = vperm.xlu2 %1366, %v1800_v7   ;;  %v441_v24 = vpop.permute.xlu2 %440 }
 0x18a   :  { %1367 = vset.pattern.permute.xlu1 %v2559_v15 }
 0x18b   :  { %727 = vperm.xlu1 %1367, %v1820_v3   ;;  %v93_v22 = vpop.xlane.xlu1 %92 }
 0x18c   :  { %v94_v40 = vmul.f32 %v93_v22, %v1764_v11  ;;  %1368 = vset.pattern.permute.xlu2 %v2559_v15 }
 0x18d   :  { %731 = vperm.xlu2 %1368, %v1800_v7   ;;  %v1891_v33 = vpop.permute.xlu2 %454 }
 0x18e   :  { %2560 = vst [vmem:[#allocation23_spill] sm:$0xff] %v1891_v33  ;;  %v101_v46 = vadd.f32 1e-05, %v94_v40  ;;  %v421_v40 = vpop.permute.xlu0 %420 }
 0x190   :  { %1435 = vrsqrt.f32 %v101_v46  ;;  %vm108_vm4 = vweird.f32 %v101_v46 }
 0x193   :  { %1369 = vset.pattern.permute.xlu1 %v2561_v5  ;;  %v2564_v5 = vmov 12  }
 0x194   :  { %742 = vperm.xlu1 %1369, %v1800_v7  }
 0x195   :  { %1370 = vset.pattern.permute.xlu2 %v2562_v0 }
 0x196   :  { %v1436_v60 = vpop.eup %1435  ;;  %749 = vperm.xlu2 %1370, %v1820_v3   ;;  %v1897_v49 = vpop.permute.xlu2 %464 }
 0x197   :  { %2563 = vst [vmem:[#allocation24_spill] sm:$0xff] %v1897_v49  ;;  %v103_v22 = vmul.f32 %v1436_v60, %v101_v46  ;;  %vm109_vm3 = vweird.f32 %v1436_v60  ;;  %v100_v49 = vmul.f32 %v1615_v43, %v1771_v38 }
 0x198   :  { %vm110_vm5 = vmor %vm108_vm4, %vm109_vm3 }
 0x199   :  { %v104_v11 = vmul.f32 %v1436_v60, %v103_v22 }
 0x19b   :  { %v105_v15 = vmul.f32 0.5, %v104_v11 }
 0x19c   :  { %1371 = vset.pattern.permute.xlu1 %v2562_v0  ;;  %v2565_v0 = vmov 13  }
 0x19d   :  { %v106_v33 = vsub.f32 1.5, %v105_v15  ;;  %753 = vperm.xlu1 %1371, %v1800_v7  }
 0x19e   :  { %1372 = vset.pattern.permute.xlu2 %v2564_v5 }
 0x19f   :  { %v107_v31 = vmul.f32 %v1436_v60, %v106_v33  ;;  %760 = vperm.xlu2 %1372, %v1820_v3   ;;  %v481_v4 = vpop.permute.xlu2 %480  ;;  %v445_v33 = vpop.permute.xlu0 %444 }
 0x1a1   :  { %v111_v22 = vsel %vm110_vm5, %v1436_v60, %v107_v31 }
 0x1a2   :  { %v112_v11 = vmul.f32 %v111_v22, %v100_v49 }
 0x1a3   :  { %v461_v42 = vpop.permute.xlu1 %460 }
 0x1a4   :  { %v117_v15 = vadd.f32 %v1633_v51, %v112_v11 }
 0x1a5   :  { %1375 = vset.pattern.permute.xlu1 %v2565_v0 }
 0x1a6   :  { %vm118_vm6 = vcmp.ge.f32.partialorder %v117_v15, 0.0  ;;  %v119_v10 = vmul.f32 0.2, %v117_v15  ;;  %771 = vperm.xlu1 %1375, %v1820_v3  }
 0x1a7   :  { %1376 = vset.pattern.permute.xlu2 %v2565_v0 }
 0x1a8   :  { %v120_v46 = vsel %vm118_vm6, %v117_v15, %v119_v10  ;;  %775 = vperm.xlu2 %1376, %v1800_v7   ;;  %v1910_v5 = vpop.permute.xlu2 %639 }
 0x1a9   :  { %2566 = vst [vmem:[#allocation25_spill] sm:$0xff] %v1910_v5  ;;  %v1912_v38 = vperm.slane %v120_v46, 0  ;;  %v1914_v31 = vperm.slane %v120_v46, 1  ;;  %v1916_v43 = vperm.slane %v120_v46, 2  ;;  %v1918_v51 = vperm.slane %v120_v46, 3 }
 0x1ab   :  { %v437_v49 = vmul.f32 %v431_v29, %v1916_v43  ;;  %v447_v60 = vmul.f32 %v441_v24, %v1918_v51  ;;  %v408_v22 = vmul.f32 %v1858_v13, %v1918_v51  ;;  %v398_v10 = vmul.f32 %v395_v6, %v1916_v43 }
 0x1ac   :  { %v417_v11 = vmul.f32 %v1852_v14, %v1912_v38  ;;  %v427_v15 = vmul.f32 %v421_v40, %v1914_v31  ;;  %v1928_v5 = vpop.permute.xlu1 %474  ;;  %v438_v46 = vmul.f32 %v1871_v26, %v1916_v43  ;;  %v448_v29 = vmul.f32 %v445_v33, %v1918_v51 }
 0x1ad   :  { %v1930_v0 = vadd.f32 %v408_v22, %v398_v10  ;;  %v457_v24 = vmul.f32 %v1880_v50, %v1912_v38  ;;  %v467_v13 = vmul.f32 %v461_v42, %v1914_v31  ;;  %v2567_v6 = vmov 14   ;;  %v471_v42 = vpop.permute.xlu0 %470 }
 0x1ae   :  { %1377 = vset.pattern.permute.xlu1 %v2567_v6  ;;  %v519_v41 = vadd.f32 %v447_v60, %v437_v49  ;;  %v517_v14 = vadd.f32 %v427_v15, %v417_v11  ;;  %v1940_v40 = vadd.f32 %v448_v29, %v438_v46  ;;  %v178_v26 = vmul.f32 %v1677_v20, %v1912_v38 }
 0x1af   :  { %782 = vperm.xlu1 %1377, %v1820_v3   ;;  %v521_v22 = vadd.f32 %v467_v13, %v457_v24  ;;  %v188_v33 = vmul.f32 %v1686_v39, %v1914_v31  ;;  %v487_v50 = vmul.f32 %v481_v4, %v1918_v51  ;;  %v198_v49 = vmul.f32 %v1718_v55, %v1916_v43 }
 0x1b0   :  { %1378 = vset.pattern.permute.xlu2 %v2567_v6  ;;  %v208_v60 = vmul.f32 %v1723_v57, %v1918_v51  ;;  %v337_v10 = vmul.f32 %v1807_v34, %v1912_v38  ;;  %v347_v39 = vmul.f32 %v1813_v58, %v1914_v31  ;;  %v357_v4 = vmul.f32 %v1804_v63, %v1916_v43 }
 0x1b1   :  { %786 = vperm.xlu2 %1378, %v1800_v7   ;;  %v1955_v11 = vpop.permute.xlu2 %650  ;;  %v494_v20 = vadd.f32 %v188_v33, %v178_v26  ;;  %v367_v15 = vmul.f32 %v1815_v36, %v1918_v51  ;;  %v177_v55 = vmul.f32 %v1699_v48, %v1912_v38  ;;  %v187_v57 = vmul.f32 %v1708_v52, %v1914_v31 }
 0x1b2   :  { %v496_v46 = vadd.f32 %v208_v60, %v198_v49  ;;  %v197_v34 = vmul.f32 %v1715_v44, %v1916_v43  ;;  %v1969_v29 = vadd.f32 %v519_v41, %v517_v14  ;;  %v477_v58 = vmul.f32 %v471_v42, %v1916_v43 }
 0x1b3   :  { %v207_v63 = vmul.f32 %v1693_v45, %v1918_v51  ;;  %v257_v36 = vmul.f32 %v1732_v62, %v1912_v38  ;;  %v493_v48 = vadd.f32 %v187_v57, %v177_v55  ;;  %v267_v52 = vmul.f32 %v1742_v2, %v1914_v31 }
 0x1b4   :  { %v528_v24 = vadd.f32 %v496_v46, %v494_v20  ;;  %v277_v44 = vmul.f32 %v1749_v8, %v1916_v43  ;;  %v509_v41 = vadd.f32 %v347_v39, %v337_v10  ;;  %v511_v14 = vadd.f32 %v367_v15, %v357_v4 }
 0x1b5   :  { %v1976_v13 = vpop.permute.xlu1 %484  ;;  %v495_v26 = vadd.f32 %v207_v63, %v197_v34  ;;  %v287_v33 = vmul.f32 %v1774_v59, %v1918_v51  ;;  %v2568_v45 = vmov 15   ;;  %v501_v62 = vadd.f32 %v267_v52, %v257_v36 }
 0x1b6   :  { %547 = vrot.lane.b32.xlu0 %v528_v24, %s1508_s0  ;;  %v258_v42 = vmul.f32 %v1754_v18, %v1912_v38  ;;  %v268_v2 = vmul.f32 %v1762_v47, %v1914_v31  ;;  %v523_v49 = vadd.f32 %v487_v50, %v477_v58  ;;  %v278_v59 = vmul.f32 %v1751_v9, %v1916_v43 }
 0x1b7   :  { %1379 = vset.pattern.permute.xlu1 %v2568_v45  ;;  %v527_v8 = vadd.f32 %v495_v26, %v493_v48  ;;  %v503_v60 = vadd.f32 %v287_v33, %v277_v44  ;;  %v288_v10 = vmul.f32 %v1758_v21, %v1918_v51  ;;  %v418_v39 = vmul.f32 %v1866_v35, %v1912_v38 }
 0x1b8   :  { %797 = vperm.xlu1 %1379, %v1800_v7   ;;  %v502_v20 = vadd.f32 %v268_v2, %v258_v42  ;;  %v428_v18 = vmul.f32 %v1860_v25, %v1914_v31  ;;  %v2569_v4 = vmov 16   ;;  %v535_v47 = vadd.f32 %v511_v14, %v509_v41  ;;  %v2573_v42 = vld [vmem:[#allocation15_spill] sm:$0xff]  ;;  %v2574_v2 = vld [vmem:[#allocation22_spill] sm:$0xff] }
 0x1b9   :  { %1380 = vset.pattern.permute.xlu2 %v2569_v4  ;;  %v531_v50 = vadd.f32 %v503_v60, %v501_v62  ;;  %v338_v9 = vmul.f32 %v1792_v30, %v1912_v38  ;;  %v348_v21 = vmul.f32 %v1876_v17, %v1914_v31  ;;  %v504_v46 = vadd.f32 %v288_v10, %v278_v59 }
 0x1ba   :  { %545 = vrot.lane.b32.xlu2 %v527_v8, %s1508_s0  ;;  %v2001_v15 = vpop.permute.xlu2 %665  ;;  %v518_v55 = vadd.f32 %v428_v18, %v418_v39  ;;  %v358_v35 = vmul.f32 %v1826_v32, %v1916_v43  ;;  %v368_v25 = vmul.f32 %v1834_v28, %v1918_v51  ;;  %v2011_v34 = vadd.f32 %v523_v49, %v521_v22 }
 0x1bb   :  { %v510_v57 = vadd.f32 %v348_v21, %v338_v9  ;;  %v218_v58 = vmul.f32 %v1730_v61, %v1912_v38  ;;  %v228_v30 = vmul.f32 %v1710_v53, %v1914_v31  ;;  %v532_v63 = vadd.f32 %v504_v46, %v502_v20  ;;  %v2575_v20 = vld [vmem:[#allocation9_spill] sm:$0xff]  ;;  %v2577_v9 = vld [vmem:[#allocation11_spill] sm:$0xff]  ;;  %v2578_v46 = vld [vmem:[#allocation12_spill] sm:$0xff] }
 0x1bc   :  { %v540_v17 = vadd.f32 %v1940_v40, %v518_v55  ;;  %v512_v36 = vadd.f32 %v368_v25, %v358_v35  ;;  %v238_v24 = vmul.f32 %v1720_v56, %v1916_v43  ;;  %v248_v28 = vmul.f32 %v1740_v1, %v1918_v51  ;;  %v2579_v25 = vld [vmem:[#allocation20_spill] sm:$0xff] }
 0x1bd   :  { %v498_v22 = vadd.f32 %v228_v30, %v218_v58  ;;  %v377_v48 = vmul.f32 %v1884_v54, %v1912_v38  ;;  %v387_v61 = vmul.f32 %v1842_v23, %v1914_v31  ;;  %v397_v40 = vmul.f32 %v1850_v37, %v1916_v43  ;;  %v2570_v37 = vld [vmem:[#allocation8_spill] sm:$0xff]  ;;  %v2580_v58 = vld [vmem:[#allocation21_spill] sm:$0xff] }
 0x1be   :  { %v2020_v32 = vpop.permute.xlu1 %632  ;;  %565 = vrot.lane.b32.xlu0 %v535_v47, %s1508_s0  ;;  %v536_v53 = vadd.f32 %v512_v36, %v510_v57  ;;  %v407_v56 = vmul.f32 %v1844_v27, %v1918_v51  ;;  %v135_v52 = vmul.f32 %v1912_v38, %v1662_v12  ;;  %v500_v1 = vadd.f32 %v248_v28, %v238_v24  ;;  %v2571_v27 = vld [vmem:[#allocation16_spill] sm:$0xff]  ;;  %v2572_v12 = vld [vmem:[#allocation14_spill] sm:$0xff] }
 0x1bf   :  { %v513_v44 = vadd.f32 %v387_v61, %v377_v48  ;;  %v146_v54 = vmul.f32 %v1914_v31, %v1675_v19  ;;  %v157_v23 = vmul.f32 %v1916_v43, %v1666_v16  ;;  %v168_v14 = vmul.f32 %v1918_v51, %v2570_v37  ;;  %v2576_v47 = vld [vmem:[#allocation10_spill] sm:$0xff] }
 0x1c0   :  { %555 = vrot.lane.b32.xlu1 %v531_v50, %s1508_s0  ;;  %v515_v41 = vadd.f32 %v407_v56, %v397_v40  ;;  %v297_v26 = vmul.f32 %v2571_v27, %v1912_v38  ;;  %v307_v33 = vmul.f32 %v2572_v12, %v1914_v31  ;;  %v2048_v62 = vadd.f32 %v500_v1, %v498_v22  ;;  %v2582_v48 = vld [vmem:[#allocation18_spill] sm:$0xff]  ;;  %v2583_v1 = vld [vmem:[#allocation19_spill] sm:$0xff] }
 0x1c1   :  { %1381 = vset.pattern.permute.xlu1 %v2569_v4  ;;  %v490_v19 = vadd.f32 %v146_v54, %v135_v52  ;;  %v317_v16 = vmul.f32 %v2573_v42, %v1916_v43  ;;  %v327_v49 = vmul.f32 %v2574_v2, %v1918_v51  ;;  %v492_v59 = vadd.f32 %v168_v14, %v157_v23  ;;  %v2584_v54 = vld [vmem:[#allocation17_spill] sm:$0xff]  ;;  %v2588_v42 = vld [vmem:[#allocation24_spill] sm:$0xff] }
 0x1c2   :  { %557 = vrot.lane.b32.xlu2 %v532_v63, %s1508_s0  ;;  %v2056_v60 = vadd.f32 %v515_v41, %v513_v44  ;;  %v505_v10 = vadd.f32 %v307_v33, %v297_v26  ;;  %v217_v39 = vmul.f32 %v2575_v20, %v1912_v38  ;;  %v227_v50 = vmul.f32 %v2576_v47, %v1914_v31  ;;  %v2581_v63 = vld [vmem:[#allocation13_spill] sm:$0xff]  ;;  %v2587_v33 = vld [vmem:[#allocation23_spill] sm:$0xff] }
 0x1c3   :  { %v2054_v8 = vpop.permute.xlu2 %676  ;;  %v507_v18 = vadd.f32 %v327_v49, %v317_v16  ;;  %v237_v21 = vmul.f32 %v2577_v9, %v1916_v43  ;;  %v247_v55 = vmul.f32 %v2578_v46, %v1918_v51  ;;  %v2066_v35 = vadd.f32 %v492_v59, %v490_v19  ;;  %v2585_v14 = vld [vmem:[#allocation5_spill] sm:$0xff] }
 0x1c4   :  { %v378_v57 = vmul.f32 %v2579_v25, %v1912_v38  ;;  %v388_v30 = vmul.f32 %v2580_v58, %v1914_v31  ;;  %v298_v36 = vmul.f32 %v2581_v63, %v1912_v38  ;;  %v497_v28 = vadd.f32 %v227_v50, %v217_v39  ;;  %v2125_v20 = vld [vmem:[%s2499_s1 + $0x88] sm:$0xff] }
 0x1c5   :  { %v2074_v24 = vadd.f32 %v507_v18, %v505_v10  ;;  %v499_v22 = vadd.f32 %v247_v55, %v237_v21  ;;  %v308_v61 = vmul.f32 %v2582_v48, %v1914_v31  ;;  %v488_v40 = vmul.f32 %v1976_v13, %v1918_v51  ;;  %v2586_v13 = vld [vmem:[#allocation6_spill] sm:$0xff] }
 0x1c6   :  { %577 = vrot.lane.b32.xlu0 %v540_v17, %s1508_s0  ;;  %v514_v52 = vadd.f32 %v388_v30, %v378_v57  ;;  %v318_v44 = vmul.f32 %v2583_v1, %v1916_v43  ;;  %v328_v23 = vmul.f32 %v2584_v54, %v1918_v51  ;;  %v134_v27 = vmul.f32 %v1912_v38, %v2585_v14  ;;  %v2183_v1 = vpop.permute.xlu0 %709 }
 0x1c7   :  { %v2081_v56 = vpop.permute.xlu1 %643  ;;  %v2088_v41 = vadd.f32 %v499_v22, %v497_v28  ;;  %v506_v37 = vadd.f32 %v308_v61, %v298_v36  ;;  %v145_v17 = vmul.f32 %v1914_v31, %v2586_v13  ;;  %v458_v19 = vmul.f32 %v2587_v33, %v1912_v38 }
 0x1c8   :  { %567 = vrot.lane.b32.xlu1 %v536_v53, %s1508_s0  ;;  %v2095_v26 = vadd.f32 %v1930_v0, %v514_v52  ;;  %v508_v12 = vadd.f32 %v328_v23, %v318_v44  ;;  %v468_v16 = vmul.f32 %v2588_v42, %v1914_v31  ;;  %v478_v53 = vmul.f32 %v1928_v5, %v1916_v43  ;;  %v2112_v0 = vld [vmem:[%s2499_s1 + $0x90] sm:$0xff] }
 0x1c9   :  { %v2105_v2 = vadd.f32 %v145_v17, %v134_v27  ;;  %v2589_v39 = vmov 3   ;;  %v2591_v50 = vmov 5   ;;  %v2592_v9 = vmov 0  }
 0x1ca   :  { %575 = vrot.lane.b32.xlu2 %v1969_v29, %s1508_s0  ;;  %v2107_v49 = vadd.f32 %v508_v12, %v506_v37  ;;  %v524_v59 = vadd.f32 %v488_v40, %v478_v53  ;;  %v522_v10 = vadd.f32 %v468_v16, %v458_v19  ;;  %v2593_v55 = vmov 2  }
 0x1cb   :  { %v2594_v58 = vmov 8   ;;  %v2595_v36 = vmov 10   ;;  %v2596_v28 = vmov 4   ;;  %v2597_v61 = vmov 6  }
 0x1cc   :  { %v2114_v38 = vpop.permute.xlu2 %694  ;;  %v542_v31 = vadd.f32 %v524_v59, %v522_v10  ;;  %v2598_v44 = vmov 13   ;;  %v2599_v54 = vmov 7   ;;  %v2600_v12 = vmov 9  }
 0x1cd   :  { %v2601_v42 = vmov 11   ;;  %v2603_v10 = vmov 12  }
 0x1ce   :  { %854 = vperm.xlu0 %1374, %v2112_v0   ;;  %v2196_v14 = vpop.permute.xlu0 %764 }
 0x1d0   :  { %v2117_v5 = vpop.permute.xlu1 %661  ;;  %615 = vrot.lane.b32.xlu1 %v2011_v34, %s1509_s21  ;;  %v2590_v34 = vmov 1  }
 0x1d2   :  { %617 = vrot.lane.b32.xlu2 %v542_v31, %s1509_s21 }
 0x1d5   :  { %v2120_v29 = vpop.permute.xlu2 %705 }
 0x1d6   :  { %1387 = vset.pattern.permute.xlu0 %v2589_v39  ;;  %v2205_v17 = vpop.permute.xlu0 %627 }
 0x1d7   :  { %883 = vperm.xlu0 %1387, %v2125_v20  }
 0x1d8   :  { %838 = vperm.xlu1 %1381, %v1800_v7  }
 0x1d9   :  { %v2130_v18 = vpop.permute.xlu1 %672 }
 0x1da   :  { %834 = vperm.xlu2 %1380, %v1820_v3  }
 0x1de   :  { %v2133_v47 = vpop.permute.xlu2 %720 }
 0x1df   :  { %1388 = vset.pattern.permute.xlu0 %v2591_v50 }
 0x1e0   :  { %1383 = vset.pattern.permute.xlu1 %v2590_v34  ;;  %683 = vperm.xlu0 %1388, %v1820_v3  }
 0x1e1   :  { %861 = vperm.xlu1 %1383, %v2125_v20  }
 0x1e2   :  { %1382 = vset.pattern.permute.xlu2 %v2592_v9  ;;  %v2140_v21 = vpop.permute.xlu1 %687 }
 0x1e3   :  { %849 = vperm.xlu2 %1382, %v2125_v20  }
 0x1e7   :  { %v2143_v46 = vpop.permute.xlu2 %731 }
 0x1e8   :  { %909 = vperm.xlu0 %1388, %v2112_v0  }
 0x1e9   :  { %1385 = vset.pattern.permute.xlu1 %v2593_v55 }
 0x1ea   :  { %872 = vperm.xlu1 %1385, %v2125_v20  }
 0x1eb   :  { %1384 = vset.pattern.permute.xlu2 %v2590_v34  ;;  %v2149_v25 = vpop.permute.xlu1 %698 }
 0x1ec   :  { %865 = vperm.xlu2 %1384, %v2112_v0  }
 0x1f0   :  { %v2152_v57 = vpop.permute.xlu2 %749  ;;  %1397 = vset.pattern.permute.xlu0 %v2594_v58 }
 0x1f1   :  { %938 = vperm.xlu0 %1397, %v2125_v20  }
 0x1f2   :  { %1389 = vset.pattern.permute.xlu1 %v2589_v39 }
 0x1f3   :  { %887 = vperm.xlu1 %1389, %v2112_v0  }
 0x1f4   :  { %1386 = vset.pattern.permute.xlu2 %v2593_v55  ;;  %v2159_v30 = vpop.permute.xlu1 %716 }
 0x1f5   :  { %876 = vperm.xlu2 %1386, %v2112_v0  }
 0x1f9   :  { %v2162_v63 = vpop.permute.xlu2 %760  ;;  %1398 = vset.pattern.permute.xlu0 %v2595_v36 }
 0x1fa   :  { %738 = vperm.xlu0 %1398, %v1820_v3  }
 0x1fb   :  { %1391 = vset.pattern.permute.xlu1 %v2596_v28 }
 0x1fc   :  { %898 = vperm.xlu1 %1391, %v2112_v0  }
 0x1fd   :  { %1390 = vset.pattern.permute.xlu2 %v2596_v28  ;;  %v2169_v22 = vpop.permute.xlu1 %727 }
 0x1fe   :  { %894 = vperm.xlu2 %1390, %v2125_v20  }
 0x202   :  { %v2172_v48 = vpop.permute.xlu2 %775  ;;  %964 = vperm.xlu0 %1398, %v2112_v0  }
 0x204   :  { %1393 = vset.pattern.permute.xlu1 %v2597_v61 }
 0x205   :  { %916 = vperm.xlu1 %1393, %v2125_v20  }
 0x206   :  { %1392 = vset.pattern.permute.xlu2 %v2591_v50  ;;  %v2178_v40 = vpop.permute.xlu1 %742 }
 0x207   :  { %905 = vperm.xlu2 %1392, %v2125_v20  }
 0x20a   :  { %1407 = vset.pattern.permute.xlu0 %v2598_v44 }
 0x20b   :  { %v2181_v52 = vpop.permute.xlu2 %786  ;;  %993 = vperm.xlu0 %1407, %v2125_v20  }
 0x20d   :  { %1395 = vset.pattern.permute.xlu1 %v2599_v54 }
 0x20e   :  { %927 = vperm.xlu1 %1395, %v2125_v20  }
 0x20f   :  { %1394 = vset.pattern.permute.xlu2 %v2597_v61  ;;  %v2190_v23 = vpop.permute.xlu1 %753 }
 0x210   :  { %920 = vperm.xlu2 %1394, %v2112_v0  }
 0x213   :  { %1408 = vset.pattern.permute.xlu0 %v2568_v45 }
 0x214   :  { %v2193_v37 = vpop.permute.xlu2 %545  ;;  %793 = vperm.xlu0 %1408, %v1820_v3  }
 0x216   :  { %1399 = vset.pattern.permute.xlu1 %v2594_v58 }
 0x217   :  { %942 = vperm.xlu1 %1399, %v2112_v0  }
 0x218   :  { %1396 = vset.pattern.permute.xlu2 %v2599_v54  ;;  %v2202_v27 = vpop.permute.xlu1 %771 }
 0x219   :  { %931 = vperm.xlu2 %1396, %v2112_v0  }
 0x21c   :  { %v558_v13 = vpop.permute.xlu2 %557 }
 0x21f   :  { %1401 = vset.pattern.permute.xlu1 %v2600_v12 }
 0x220   :  { %953 = vperm.xlu1 %1401, %v2112_v0  }
 0x221   :  { %1400 = vset.pattern.permute.xlu2 %v2600_v12  ;;  %v2210_v3 = vpop.permute.xlu1 %782 }
 0x222   :  { %949 = vperm.xlu2 %1400, %v2125_v20  }
 0x224   :  { %v576_v33 = vpop.permute.xlu2 %575 }
 0x225   :  { %v581_v19 = vadd.f32 %v576_v33, %v2056_v60 }
 0x227   :  { %595 = vrot.lane.b32.xlu0 %v581_v19, %s1510_s24  ;;  %v1441_v19 = vld [vmem:[%s2499_s1 + $0x68] sm:$0xff] }
 0x228   :  { %1403 = vset.pattern.permute.xlu1 %v2601_v42  ;;  %v548_v16 = vpop.permute.xlu0 %547 }
 0x229   :  { %971 = vperm.xlu1 %1403, %v2125_v20   ;;  %v2218_v53 = vadd.f32 %v548_v16, %v2066_v35 }
 0x22a   :  { %1402 = vset.pattern.permute.xlu2 %v2595_v36  ;;  %v2221_v59 = vpop.permute.xlu1 %797 }
 0x22b   :  { %2602 = vst [vmem:[#allocation8_spill] sm:$0xff] %v2221_v59  ;;  %960 = vperm.xlu2 %1402, %v2125_v20  }
 0x22f   :  { %1019 = vperm.xlu0 %1408, %v2112_v0  }
 0x230   :  { %v566_v60 = vpop.permute.xlu0 %565 }
 0x231   :  { %1405 = vset.pattern.permute.xlu1 %v2603_v10  ;;  %v2227_v31 = vadd.f32 %v566_v60, %v2074_v24 }
 0x232   :  { %v556_v33 = vpop.permute.xlu1 %555  ;;  %982 = vperm.xlu1 %1405, %v2125_v20  }
 0x233   :  { %1404 = vset.pattern.permute.xlu2 %v2601_v42  ;;  %v561_v35 = vadd.f32 %v556_v33, %v2088_v41  ;;  %v562_v33 = vadd.f32 %v558_v13, %v2048_v62 }
 0x234   :  { %975 = vperm.xlu2 %1404, %v2112_v0  }
 0x237   :  { %1413 = vset.pattern.permute.xlu0 %v2593_v55 }
 0x238   :  { %148 = vperm.xlu0 %1413, %v1441_v19   ;;  %v578_v16 = vpop.permute.xlu0 %577 }
 0x239   :  { %v582_v41 = vadd.f32 %v578_v16, %v2095_v26 }
 0x23a   :  { %v568_v59 = vpop.permute.xlu1 %567  ;;  %585 = vrot.lane.b32.xlu1 %v561_v35, %s1510_s24  ;;  %v2276_v35 = vpop.permute.xlu2 %617 }
 0x23b   :  { %v2239_v24 = vadd.f32 %v568_v59, %v2107_v49  ;;  %1409 = vset.pattern.permute.xlu1 %v2598_v44 }
 0x23c   :  { %1406 = vset.pattern.permute.xlu2 %v2603_v10 }
 0x23d   :  { %986 = vperm.xlu2 %1406, %v2112_v0  }
 0x240   :  { %654 = vperm.xlu0 %1413, %v1800_v7   ;;  %v2246_v55 = vpop.permute.xlu0 %854 }
 0x241   :  { %2604 = vst [vmem:[#allocation16_spill] sm:$0xff] %v2246_v55 }
 0x242   :  { %v2248_v60 = vpop.permute.xlu1 %615  ;;  %597 = vrot.lane.b32.xlu1 %v582_v41, %s1510_s24  ;;  %v2284_v41 = vpop.permute.xlu2 %834 }
 0x245   :  { %587 = vrot.lane.b32.xlu2 %v562_v33, %s1510_s24 }
 0x246   :  { %1410 = vset.pattern.permute.xlu2 %v2567_v6 }
 0x249   :  { %v2256_v59 = vpop.permute.xlu0 %883 }
 0x24a   :  { %v2254_v49 = vpop.permute.xlu1 %838  ;;  %997 = vperm.xlu1 %1409, %v2112_v0  }
 0x24d   :  { %1004 = vperm.xlu2 %1410, %v2125_v20  }
 0x252   :  { %1411 = vset.pattern.permute.xlu1 %v2567_v6  ;;  %v2263_v26 = vpop.permute.xlu0 %683 }
 0x253   :  { %v2261_v7 = vpop.permute.xlu1 %861  ;;  %1008 = vperm.xlu1 %1411, %v2112_v0  }
 0x255   :  { %1412 = vset.pattern.permute.xlu2 %v2568_v45 }
 0x256   :  { %1015 = vperm.xlu2 %1412, %v2125_v20  }
 0x25a   :  { %v2272_v13 = vpop.permute.xlu0 %909 }
 0x25b   :  { %1414 = vset.pattern.permute.xlu1 %v2569_v4  ;;  %2605 = vst [vmem:[#allocation14_spill] sm:$0xff] %v2272_v13 }
 0x25c   :  { %v2269_v62 = vpop.permute.xlu1 %872  ;;  %1056 = vperm.xlu1 %1414, %v2125_v20  }
 0x25e   :  { %1415 = vset.pattern.permute.xlu2 %v2569_v4 }
 0x25f   :  { %1060 = vperm.xlu2 %1415, %v2112_v0   ;;  %v2293_v0 = vld [vmem:[%s2499_s1 + $0x98] sm:$0x1]  ;;  %s1511_s1 = smov 120  }
 0x263   :  { %v2281_v16 = vpop.permute.xlu0 %938 }
 0x264   :  { %1416 = vset.pattern.permute.xlu1 %v2592_v9  ;;  %2607 = vst [vmem:[#allocation22_spill] sm:$0xff] %v2281_v16  ;;  %v2297_v9 = vpop.permute.xlu2 %849 }
 0x265   :  { %v2279_v19 = vpop.permute.xlu1 %887  ;;  %1070 = vperm.xlu1 %1416, %v2293_v0  }
 0x266   :  { %2606 = vst [vmem:[#allocation15_spill] sm:$0xff] %v2279_v19 }
 0x267   :  { %1417 = vset.pattern.permute.xlu2 %v2590_v34 }
 0x268   :  { %1075 = vperm.xlu2 %1417, %v2293_v0  }
 0x26c   :  { %v2288_v20 = vpop.permute.xlu0 %738 }
 0x26d   :  { %1418 = vset.pattern.permute.xlu1 %v2589_v39 }
 0x26e   :  { %v2286_v33 = vpop.permute.xlu1 %898  ;;  %1090 = vperm.xlu1 %1418, %v2293_v0  }
 0x26f   :  { %2608 = vst [vmem:[#allocation9_spill] sm:$0xff] %v2286_v33  ;;  %v2306_v33 = vpop.permute.xlu2 %865 }
 0x270   :  { %1419 = vset.pattern.permute.xlu2 %v2596_v28  ;;  %2611 = vst [vmem:[#allocation12_spill] sm:$0xff] %v2306_v33 }
 0x274   :  { %v2301_v34 = vpop.permute.xlu0 %964 }
 0x275   :  { %2610 = vst [vmem:[#allocation11_spill] sm:$0xff] %v2301_v34 }
 0x276   :  { %1420 = vset.pattern.permute.xlu1 %v2591_v50 }
 0x277   :  { %v2299_v13 = vpop.permute.xlu1 %916  ;;  %1104 = vperm.xlu1 %1420, %v2293_v0   ;;  %v2314_v16 = vpop.permute.xlu2 %876 }
 0x278   :  { %2609 = vst [vmem:[#allocation10_spill] sm:$0xff] %v2299_v13 }
 0x279   :  { %2614 = vst [vmem:[#allocation13_spill] sm:$0xff] %v2314_v16 }
 0x27d   :  { %v2311_v55 = vpop.permute.xlu0 %993 }
 0x27e   :  { %2613 = vst [vmem:[#allocation21_spill] sm:$0xff] %v2311_v55 }
 0x27f   :  { %1423 = vset.pattern.permute.xlu1 %v2594_v58  ;;  %v2324_v34 = vpop.permute.xlu2 %894 }
 0x280   :  { %v2308_v19 = vpop.permute.xlu1 %927  ;;  %1125 = vperm.xlu1 %1423, %v2293_v0  }
 0x281   :  { %2612 = vst [vmem:[#allocation20_spill] sm:$0xff] %v2308_v19 }
 0x286   :  { %v2320_v39 = vpop.permute.xlu0 %793 }
 0x287   :  { %v2331_v58 = vpop.permute.xlu2 %905 }
 0x288   :  { %1425 = vset.pattern.permute.xlu1 %v2595_v36  ;;  %2618 = vst [vmem:[#allocation5_spill] sm:$0xff] %v2331_v58 }
 0x289   :  { %v2316_v13 = vpop.permute.xlu1 %942  ;;  %1138 = vperm.xlu1 %1425, %v2293_v0  }
 0x28a   :  { %2615 = vst [vmem:[#allocation18_spill] sm:$0xff] %v2316_v13 }
 0x28f   :  { %v2340_v36 = vpop.permute.xlu2 %920 }
 0x290   :  { %2621 = vst [vmem:[#allocation24_spill] sm:$0xff] %v2340_v36 }
 0x291   :  { %1428 = vset.pattern.permute.xlu1 %v2598_v44 }
 0x292   :  { %v2322_v28 = vpop.permute.xlu1 %953  ;;  %1159 = vperm.xlu1 %1428, %v2293_v0  }
 0x293   :  { %2616 = vst [vmem:[#allocation19_spill] sm:$0xff] %v2322_v28 }
 0x299   :  { %v596_v50 = vpop.permute.xlu0 %595 }
 0x29a   :  { %v601_v33 = vadd.f32 %v596_v50, %v2227_v31  ;;  %1430 = vset.pattern.permute.xlu1 %v2568_v45 }
 0x29b   :  { %v2329_v16 = vpop.permute.xlu1 %971  ;;  %1173 = vperm.xlu1 %1430, %v2293_v0  }
 0x29c   :  { %2617 = vst [vmem:[#allocation17_spill] sm:$0xff] %v2329_v16  ;;  %605 = vrot.lane.b32.xlu2 %v601_v33, %s1511_s1  ;;  %v2622_v33 = vld [vmem:[#allocation7_spill] sm:$0xff]  ;;  %v2350_v16 = vpop.permute.xlu2 %931 }
 0x29d   :  { %v167_v50 = vmul.f32 %v1918_v51, %v2622_v33  ;;  %2623 = vst [vmem:[#allocation7_spill] sm:$0xff] %v2350_v16 }
 0x2a1   :  { %v2335_v28 = vpop.permute.xlu0 %1019 }
 0x2a2   :  { %2619 = vst [vmem:[#allocation6_spill] sm:$0xff] %v2335_v28 }
 0x2a4   :  { %v2337_v13 = vpop.permute.xlu1 %982  ;;  %1097 = vperm.xlu2 %1419, %v2293_v0  }
 0x2a5   :  { %2620 = vst [vmem:[#allocation23_spill] sm:$0xff] %v2337_v13 }
 0x2aa   :  { %v149_v31 = vpop.permute.xlu0 %148 }
 0x2ab   :  { %v156_v44 = vmul.f32 %v1916_v43, %v149_v31  ;;  %v2356_v43 = vpop.permute.xlu2 %949 }
 0x2ac   :  { %v586_v55 = vpop.permute.xlu1 %585  ;;  %1421 = vset.pattern.permute.xlu2 %v2597_v61 }
 0x2ad   :  { %v491_v28 = vadd.f32 %v167_v50, %v156_v44  ;;  %1111 = vperm.xlu2 %1421, %v2293_v0  }
 0x2af   :  { %v525_v13 = vadd.f32 %v491_v28, %v2105_v2 }
 0x2b1   :  { %v551_v45 = vadd.f32 %v2193_v37, %v525_v13 }
 0x2b3   :  { %v591_v36 = vadd.f32 %v586_v55, %v551_v45  ;;  %v2361_v51 = vpop.permute.xlu2 %960 }
 0x2b4   :  { %v598_v19 = vpop.permute.xlu1 %597 }
 0x2b5   :  { %v602_v58 = vadd.f32 %v598_v19, %v2239_v24  ;;  %1424 = vset.pattern.permute.xlu2 %v2600_v12 }
 0x2b6   :  { %1130 = vperm.xlu2 %1424, %v2293_v0  }
 0x2b7   :  { %607 = vrot.lane.b32.xlu0 %v602_v58, %s1511_s1 }
 0x2bb   :  { %v2367_v2 = vpop.permute.xlu2 %975 }
 0x2bc   :  { %2624 = vst [vmem:[#allocation26_spill] sm:$0xff] %v2367_v2 }
 0x2be   :  { %1426 = vset.pattern.permute.xlu2 %v2601_v42  ;;  %v2382_v42 = vpop.permute.xlu1 %997 }
 0x2bf   :  { %1083 = vperm.xlu0 %1413, %v2293_v0   ;;  %1145 = vperm.xlu2 %1426, %v2293_v0   ;;  %2627 = vst [vmem:[#allocation29_spill] sm:$0xff] %v2382_v42 }
 0x2c3   :  { %v2373_v61 = vpop.permute.xlu2 %986 }
 0x2c4   :  { %2625 = vst [vmem:[#allocation27_spill] sm:$0xff] %v2373_v61 }
 0x2c6   :  { %v2386_v24 = vpop.permute.xlu1 %1008 }
 0x2c7   :  { %1422 = vset.pattern.permute.xlu0 %v2599_v54  ;;  %1429 = vset.pattern.permute.xlu2 %v2567_v6  ;;  %2629 = vst [vmem:[#allocation31_spill] sm:$0xff] %v2386_v24  ;;  %v2631_v24 = vld [vmem:[#allocation25_spill] sm:$0xff] }
 0x2c8   :  { %1118 = vperm.xlu0 %1422, %v2293_v0   ;;  %1166 = vperm.xlu2 %1429, %v2293_v0  }
 0x2cb   :  { %v588_v54 = vpop.permute.xlu2 %587 }
 0x2ce   :  { %v2388_v19 = vpop.permute.xlu1 %1056 }
 0x2cf   :  { %2630 = vst [vmem:[#allocation32_spill] sm:$0xff] %v2388_v19 }
 0x2d0   :  { %1427 = vset.pattern.permute.xlu0 %v2603_v10  ;;  %1431 = vset.pattern.permute.xlu2 %v2569_v4 }
 0x2d1   :  { %1152 = vperm.xlu0 %1427, %v2293_v0   ;;  %1195 = vperm.xlu2 %1431, %v2293_v0  }
 0x2d3   :  { %v2376_v6 = vpop.permute.xlu2 %1004 }
 0x2d9   :  { %1432 = vset.pattern.permute.xlu0 %v2569_v4 }
 0x2db   :  { %v2378_v37 = vpop.permute.xlu2 %1015 }
 0x2e3   :  { %v2380_v12 = vpop.permute.xlu2 %1060 }
 0x2e4   :  { %2626 = vst [vmem:[#allocation28_spill] sm:$0xff] %v2380_v12  ;;  %v655_v12 = vpop.permute.xlu0 %654 }
 0x2eb   :  { %v2384_v10 = vpop.permute.xlu2 %1075 }
 0x2ec   :  { %2628 = vst [vmem:[#allocation30_spill] sm:$0xff] %v2384_v10 }
 0x2f6   :  { %v606_v55 = vpop.permute.xlu2 %605 }
 0x2f7   :  { %v611_v13 = vadd.f32 %v606_v55, %v591_v36  ;;  %v2395_v55 = vpop.permute.xlu1 %1070 }
 0x2f8   :  { %2632 = vst [vmem:[#allocation25_spill] sm:$0xff] %v2395_v55 }
 0x2f9   :  { %v621_v0 = vadd.f32 %v2248_v60, %v611_v13 }
 0x2fb   :  { %v635_v4 = vperm.slane %v621_v0, 0  ;;  %v646_v28 = vperm.slane %v621_v0, 1  ;;  %v657_v58 = vperm.slane %v621_v0, 2  ;;  %v668_v31 = vperm.slane %v621_v0, 3 }
 0x2fc   :  { %v679_v33 = vperm.slane %v621_v0, 4  ;;  %v690_v50 = vperm.slane %v621_v0, 5  ;;  %v701_v44 = vperm.slane %v621_v0, 6  ;;  %v712_v45 = vperm.slane %v621_v0, 7 }
 0x2fd   :  { %v636_v42 = vmul.f32 %v635_v4, %v2205_v17  ;;  %v637_v10 = vmul.f32 %v635_v4, %v2020_v32  ;;  %v647_v61 = vmul.f32 %v646_v28, %v2631_v24  ;;  %v648_v36 = vmul.f32 %v646_v28, %v2081_v56 }
 0x2fe   :  { %v658_v60 = vmul.f32 %v657_v58, %v1955_v11  ;;  %v669_v13 = vmul.f32 %v668_v31, %v2117_v5  ;;  %v670_v19 = vmul.f32 %v668_v31, %v2001_v15  ;;  %v680_v2 = vmul.f32 %v679_v33, %v2130_v18 }
 0x2ff   :  { %v681_v0 = vmul.f32 %v679_v33, %v2054_v8  ;;  %v691_v17 = vmul.f32 %v690_v50, %v2263_v26  ;;  %v692_v32 = vmul.f32 %v690_v50, %v2140_v21  ;;  %v702_v24 = vmul.f32 %v701_v44, %v2114_v38  ;;  %v2409_v38 = vpop.permute.xlu1 %1090 }
 0x300   :  { %v703_v56 = vmul.f32 %v701_v44, %v2149_v25  ;;  %v713_v4 = vmul.f32 %v712_v45, %v2120_v29  ;;  %v714_v11 = vmul.f32 %v712_v45, %v2183_v1  ;;  %v659_v28 = vmul.f32 %v657_v58, %v655_v12 }
 0x301   :  { %v592_v5 = vadd.f32 %v588_v54, %v2218_v53  ;;  %v803_v15 = vadd.f32 %v647_v61, %v636_v42  ;;  %v804_v31 = vadd.f32 %v648_v36, %v637_v10  ;;  %v805_v18 = vadd.f32 %v669_v13, %v658_v60 }
 0x302   :  { %v807_v55 = vadd.f32 %v691_v17, %v680_v2  ;;  %v808_v8 = vadd.f32 %v692_v32, %v681_v0  ;;  %v809_v33 = vadd.f32 %v713_v4, %v702_v24  ;;  %v810_v26 = vadd.f32 %v714_v11, %v703_v56  ;;  %v2633_v24 = vld [vmem:[#allocation8_spill] sm:$0xff] }
 0x303   :  { %v806_v16 = vadd.f32 %v670_v19, %v659_v28  ;;  %v819_v29 = vadd.f32 %v805_v18, %v803_v15 }
 0x304   :  { %v821_v44 = vadd.f32 %v809_v33, %v807_v55  ;;  %v822_v1 = vadd.f32 %v810_v26, %v808_v8 }
 0x305   :  { %v820_v12 = vadd.f32 %v806_v16, %v804_v31  ;;  %v2430_v31 = vpop.permute.xlu2 %1097 }
 0x307   :  { %v2428_v15 = vpop.permute.xlu1 %1104 }
 0x329   :  { %v608_v21 = vpop.permute.xlu0 %607 }
 0x32a   :  { %v612_v50 = vadd.f32 %v608_v21, %v592_v5 }
 0x32c   :  { %v622_v25 = vadd.f32 %v2276_v35, %v612_v50 }
 0x32e   :  { %v723_v58 = vperm.slane %v622_v25, 0  ;;  %v734_v53 = vperm.slane %v622_v25, 1  ;;  %v745_v61 = vperm.slane %v622_v25, 2  ;;  %v756_v54 = vperm.slane %v622_v25, 3 }
 0x32f   :  { %v767_v42 = vperm.slane %v622_v25, 4  ;;  %v778_v2 = vperm.slane %v622_v25, 5  ;;  %v789_v10 = vperm.slane %v622_v25, 6  ;;  %v800_v45 = vperm.slane %v622_v25, 7 }
 0x330   :  { %v724_v19 = vmul.f32 %v723_v58, %v2159_v30  ;;  %v725_v36 = vmul.f32 %v723_v58, %v2133_v47  ;;  %v735_v60 = vmul.f32 %v734_v53, %v2169_v22  ;;  %v736_v35 = vmul.f32 %v734_v53, %v2143_v46  ;;  %v2436_v53 = vpop.permute.xlu1 %1125 }
 0x331   :  { %v746_v55 = vmul.f32 %v745_v61, %v2288_v20  ;;  %v747_v16 = vmul.f32 %v745_v61, %v2178_v40  ;;  %v757_v13 = vmul.f32 %v756_v54, %v2152_v57  ;;  %v758_v0 = vmul.f32 %v756_v54, %v2190_v23 }
 0x332   :  { %v768_v17 = vmul.f32 %v767_v42, %v2162_v63  ;;  %v769_v32 = vmul.f32 %v767_v42, %v2196_v14  ;;  %v779_v30 = vmul.f32 %v778_v2, %v2202_v27  ;;  %v780_v47 = vmul.f32 %v778_v2, %v2172_v48 }
 0x333   :  { %v790_v22 = vmul.f32 %v789_v10, %v2210_v3  ;;  %v791_v46 = vmul.f32 %v789_v10, %v2181_v52  ;;  %v801_v20 = vmul.f32 %v800_v45, %v2320_v39  ;;  %v802_v40 = vmul.f32 %v800_v45, %v2633_v24  ;;  %v2438_v10 = vpop.permute.xlu2 %1111  ;;  %v2638_v24 = vld [vmem:[#allocation17_spill] sm:$0xff] }
 0x334   :  { %v811_v56 = vadd.f32 %v735_v60, %v724_v19  ;;  %v812_v57 = vadd.f32 %v736_v35, %v725_v36  ;;  %v813_v4 = vadd.f32 %v757_v13, %v746_v55  ;;  %v814_v23 = vadd.f32 %v758_v0, %v747_v16  ;;  %v2634_v60 = vld [vmem:[#allocation5_spill] sm:$0xff]  ;;  %v2635_v55 = vld [vmem:[#allocation10_spill] sm:$0xff]  ;;  %v2636_v13 = vld [vmem:[#allocation20_spill] sm:$0xff] }
 0x335   :  { %v815_v11 = vadd.f32 %v779_v30, %v768_v17  ;;  %v816_v63 = vadd.f32 %v780_v47, %v769_v32  ;;  %v817_v28 = vadd.f32 %v801_v20, %v790_v22  ;;  %v818_v14 = vadd.f32 %v802_v40, %v791_v46  ;;  %v2637_v47 = vld [vmem:[#allocation22_spill] sm:$0xff] }
 0x336   :  { %v823_v5 = vadd.f32 %v813_v4, %v811_v56  ;;  %v824_v27 = vadd.f32 %v814_v23, %v812_v57  ;;  %v827_v52 = vadd.f32 %v821_v44, %v819_v29  ;;  %v828_v39 = vadd.f32 %v822_v1, %v820_v12  ;;  %v2639_v56 = vld [vmem:[#allocation23_spill] sm:$0xff]  ;;  %v2640_v4 = vld [vmem:[#allocation21_spill] sm:$0xff] }
 0x337   :  { %v825_v48 = vadd.f32 %v817_v28, %v815_v11  ;;  %v826_v3 = vadd.f32 %v818_v14, %v816_v63 }
 0x339   :  { %v829_v18 = vadd.f32 %v825_v48, %v823_v5  ;;  %v830_v8 = vadd.f32 %v826_v3, %v824_v27 }
 0x33b   :  { %v831_v33 = vadd.f32 %v829_v18, %v827_v52  ;;  %v832_v26 = vadd.f32 %v830_v8, %v828_v39  ;;  %v2464_v39 = vpop.permute.xlu1 %1138  ;;  %v2641_v8 = vld [vmem:[#allocation16_spill] sm:$0xff] }
 0x33d   :  { %v841_v21 = vadd.f32 %v2284_v41, %v831_v33  ;;  %v842_v50 = vadd.f32 %v2254_v49, %v832_v26  ;;  %v2642_v26 = vld [vmem:[#allocation12_spill] sm:$0xff] }
 0x33f   :  { %v843_v25 = vmax.f32 %v841_v21, 0.0  ;;  %v2434_v58 = vmax.f32 %v842_v50, 0.0  ;;  %v2468_v50 = vpop.permute.xlu2 %1130 }
 0x341   :  { %v857_v61 = vperm.slane %v843_v25, 0  ;;  %v868_v54 = vperm.slane %v843_v25, 1  ;;  %v879_v42 = vperm.slane %v843_v25, 2  ;;  %v890_v2 = vperm.slane %v843_v25, 3 }
 0x342   :  { %v901_v29 = vperm.slane %v843_v25, 4  ;;  %v912_v44 = vperm.slane %v843_v25, 5  ;;  %v923_v1 = vperm.slane %v843_v25, 6  ;;  %v934_v12 = vperm.slane %v843_v25, 7  ;;  %v2643_v25 = vld [vmem:[#allocation13_spill] sm:$0xff] }
 0x343   :  { %v858_v45 = vmul.f32 %v857_v61, %v2297_v9  ;;  %v869_v41 = vmul.f32 %v868_v54, %v2261_v7  ;;  %v880_v49 = vmul.f32 %v879_v42, %v2269_v62  ;;  %v891_v19 = vmul.f32 %v890_v2, %v2256_v59 }
 0x344   :  { %v902_v36 = vmul.f32 %v901_v29, %v2324_v34  ;;  %v913_v35 = vmul.f32 %v912_v44, %v2634_v60  ;;  %v924_v16 = vmul.f32 %v923_v1, %v2635_v55  ;;  %v935_v0 = vmul.f32 %v934_v12, %v2636_v13 }
 0x345   :  { %v945_v17 = vperm.slane %v2434_v58, 0  ;;  %v956_v32 = vperm.slane %v2434_v58, 1  ;;  %v967_v9 = vperm.slane %v2434_v58, 2  ;;  %v978_v7 = vperm.slane %v2434_v58, 3 }
 0x346   :  { %v989_v62 = vperm.slane %v2434_v58, 4  ;;  %v1000_v59 = vperm.slane %v2434_v58, 5  ;;  %v1011_v34 = vperm.slane %v2434_v58, 6  ;;  %v1022_v30 = vperm.slane %v2434_v58, 7 }
 0x347   :  { %v946_v22 = vmul.f32 %v945_v17, %v2637_v47  ;;  %v957_v46 = vmul.f32 %v956_v32, %v2356_v43  ;;  %v968_v20 = vmul.f32 %v967_v9, %v2361_v51  ;;  %v979_v40 = vmul.f32 %v978_v7, %v2638_v24  ;;  %v2651_v24 = vld [vmem:[#allocation11_spill] sm:$0xff] }
 0x348   :  { %v990_v57 = vmul.f32 %v989_v62, %v2639_v56  ;;  %v1001_v23 = vmul.f32 %v1000_v59, %v2640_v4  ;;  %v1012_v11 = vmul.f32 %v1011_v34, %v2376_v6  ;;  %v1023_v63 = vmul.f32 %v1022_v30, %v2378_v37  ;;  %v2654_v4 = vld [vmem:[#allocation29_spill] sm:$0xff] }
 0x349   :  { %v1025_v28 = vadd.f32 %v869_v41, %v858_v45  ;;  %v1027_v14 = vadd.f32 %v891_v19, %v880_v49  ;;  %v1029_v5 = vadd.f32 %v913_v35, %v902_v36  ;;  %v1031_v27 = vadd.f32 %v935_v0, %v924_v16  ;;  %v2644_v45 = vld [vmem:[#allocation15_spill] sm:$0xff]  ;;  %v1084_v19 = vpop.permute.xlu0 %1083  ;;  %v2645_v36 = vld [vmem:[#allocation9_spill] sm:$0xff]  ;;  %v2646_v35 = vld [vmem:[#allocation14_spill] sm:$0xff] }
 0x34a   :  { %v1033_v48 = vadd.f32 %v957_v46, %v946_v22  ;;  %v1035_v3 = vadd.f32 %v979_v40, %v968_v20  ;;  %v1037_v52 = vadd.f32 %v1001_v23, %v990_v57  ;;  %v1039_v43 = vadd.f32 %v1023_v63, %v1012_v11  ;;  %v2647_v16 = vld [vmem:[#allocation24_spill] sm:$0xff]  ;;  %v2650_v46 = vld [vmem:[#allocation19_spill] sm:$0xff]  ;;  %v2656_v63 = vld [vmem:[#allocation6_spill] sm:$0xff] }
 0x34b   :  { %v1041_v51 = vadd.f32 %v1027_v14, %v1025_v28  ;;  %v1043_v18 = vadd.f32 %v1031_v27, %v1029_v5  ;;  %v859_v33 = vmul.f32 %v857_v61, %v2641_v8  ;;  %v870_v21 = vmul.f32 %v868_v54, %v2642_v26  ;;  %v2648_v61 = vld [vmem:[#allocation7_spill] sm:$0xff]  ;;  %v2649_v54 = vld [vmem:[#allocation18_spill] sm:$0xff]  ;;  %v2657_v27 = vld [vmem:[#allocation32_spill] sm:$0xff] }
 0x34c   :  { %v1045_v6 = vadd.f32 %v1035_v3, %v1033_v48  ;;  %v1047_v37 = vadd.f32 %v1039_v43, %v1037_v52  ;;  %v881_v58 = vmul.f32 %v879_v42, %v2643_v25  ;;  %v892_v41 = vmul.f32 %v890_v2, %v2644_v45  ;;  %v2652_v42 = vld [vmem:[#allocation26_spill] sm:$0xff]  ;;  %v2653_v2 = vld [vmem:[#allocation27_spill] sm:$0xff]  ;;  %v2658_v26 = vld [vmem:[#allocation25_spill] sm:$0xff] }
 0x34d   :  { %v1049_v49 = vadd.f32 %v1043_v18, %v1041_v51  ;;  %v903_v60 = vmul.f32 %v901_v29, %v2645_v36  ;;  %v914_v55 = vmul.f32 %v912_v44, %v2646_v35  ;;  %v925_v13 = vmul.f32 %v923_v1, %v2647_v16  ;;  %v2655_v11 = vld [vmem:[#allocation31_spill] sm:$0xff]  ;;  %v1160_v51 = vpop.permute.xlu1 %1159  ;;  %v2659_v36 = vld [vmem:[#allocation30_spill] sm:$0xff] }
 0x34e   :  { %v1051_v0 = vadd.f32 %v1047_v37, %v1045_v6  ;;  %v936_v47 = vmul.f32 %v934_v12, %v2648_v61  ;;  %v947_v22 = vmul.f32 %v945_v17, %v2649_v54  ;;  %v958_v20 = vmul.f32 %v956_v32, %v2650_v46  ;;  %v2660_v46 = vld [vmem:[#allocation28_spill] sm:$0xff] }
 0x34f   :  { %v969_v40 = vmul.f32 %v967_v9, %v2651_v24  ;;  %v980_v56 = vmul.f32 %v978_v7, %v2652_v42  ;;  %v991_v57 = vmul.f32 %v989_v62, %v2653_v2  ;;  %v1002_v23 = vmul.f32 %v1000_v59, %v2654_v4 }
 0x350   :  { %v1053_v29 = vadd.f32 %v1051_v0, %v1049_v49  ;;  %v1013_v44 = vmul.f32 %v1011_v34, %v2655_v11  ;;  %v1024_v1 = vmul.f32 %v1022_v30, %v2656_v63  ;;  %v1026_v28 = vadd.f32 %v870_v21, %v859_v33  ;;  %v1146_v34 = vpop.permute.xlu2 %1145 }
 0x351   :  { %v1028_v14 = vadd.f32 %v892_v41, %v881_v58  ;;  %v1030_v12 = vadd.f32 %v914_v55, %v903_v60  ;;  %v1032_v5 = vadd.f32 %v936_v47, %v925_v13  ;;  %v1034_v17 = vadd.f32 %v958_v20, %v947_v22  ;;  %v1119_v8 = vpop.permute.xlu0 %1118 }
 0x352   :  { %v1063_v32 = vadd.f32 %v2657_v27, %v1053_v29  ;;  %v1036_v48 = vadd.f32 %v980_v56, %v969_v40  ;;  %v1038_v9 = vadd.f32 %v1002_v23, %v991_v57  ;;  %v1040_v3 = vadd.f32 %v1024_v1, %v1013_v44 }
 0x353   :  { %v1042_v7 = vadd.f32 %v1028_v14, %v1026_v28  ;;  %v1044_v52 = vadd.f32 %v1032_v5, %v1030_v12 }
 0x354   :  { %v1065_v62 = vmax.f32 %v1063_v32, 0.0  ;;  %v1046_v43 = vadd.f32 %v1036_v48, %v1034_v17  ;;  %v1048_v59 = vadd.f32 %v1040_v3, %v1038_v9 }
 0x355   :  { %v1050_v18 = vadd.f32 %v1044_v52, %v1042_v7  ;;  %v1174_v42 = vpop.permute.xlu1 %1173 }
 0x356   :  { %v1107_v30 = vrot.slane %v1065_v62, 5  ;;  %v1100_v33 = vrot.slane %v1065_v62, 4  ;;  %v1073_v21 = vmul.f32 %v2658_v26, %v1065_v62  ;;  %v1079_v6 = vrot.slane %v1065_v62, 1 }
 0x357   :  { %v1086_v37 = vrot.slane %v1065_v62, 2  ;;  %v1093_v25 = vrot.slane %v1065_v62, 3  ;;  %v1052_v58 = vadd.f32 %v1048_v59, %v1046_v43  ;;  %v1114_v45 = vrot.slane %v1065_v62, 6 }
 0x358   :  { %v1109_v41 = vmul.f32 %v1107_v30, %v2428_v15  ;;  %v1102_v49 = vmul.f32 %v1100_v33, %v2430_v31  ;;  %v1081_v60 = vmul.f32 %v1079_v6, %v2659_v36  ;;  %v1121_v35 = vrot.slane %v1065_v62, 7  ;;  %v1167_v4 = vpop.permute.xlu2 %1166 }
 0x359   :  { %v1095_v55 = vmul.f32 %v1093_v25, %v2409_v38  ;;  %v1088_v16 = vmul.f32 %v1086_v37, %v1084_v19  ;;  %v1054_v13 = vadd.f32 %v1052_v58, %v1050_v18  ;;  %v1116_v0 = vmul.f32 %v1114_v45, %v2438_v10  ;;  %v1153_v38 = vpop.permute.xlu0 %1152 }
 0x35a   :  { %v1179_v61 = vadd.f32 %v1081_v60, %v1073_v21  ;;  %v1123_v47 = vmul.f32 %v1121_v35, %v1119_v8  ;;  %v1181_v54 = vadd.f32 %v1109_v41, %v1102_v49 }
 0x35b   :  { %v1180_v22 = vadd.f32 %v1095_v55, %v1088_v16  ;;  %v1064_v20 = vadd.f32 %v2660_v46, %v1054_v13 }
 0x35c   :  { %v1182_v24 = vadd.f32 %v1123_v47, %v1116_v0 }
 0x35d   :  { %v1066_v40 = vmax.f32 %v1064_v20, 0.0  ;;  %v1187_v15 = vadd.f32 %v1180_v22, %v1179_v61 }
 0x35e   :  { %v1188_v57 = vadd.f32 %v1182_v24, %v1181_v54 }
 0x35f   :  { %v1141_v31 = vrot.slane %v1066_v40, 2  ;;  %v1134_v56 = vrot.slane %v1066_v40, 1  ;;  %v1162_v2 = vrot.slane %v1066_v40, 5  ;;  %v1148_v19 = vrot.slane %v1066_v40, 3 }
 0x360   :  { %v1176_v23 = vrot.slane %v1066_v40, 7  ;;  %v1169_v29 = vrot.slane %v1066_v40, 6  ;;  %v1155_v10 = vrot.slane %v1066_v40, 4  ;;  %v1128_v11 = vmul.f32 %v2436_v53, %v1066_v40  ;;  %v1196_v62 = vpop.permute.xlu2 %1195 }
 0x361   :  { %v1143_v44 = vmul.f32 %v1141_v31, %v2464_v39  ;;  %v1136_v63 = vmul.f32 %v1134_v56, %v2468_v50  ;;  %v1164_v1 = vmul.f32 %v1162_v2, %v1160_v51  ;;  %v1150_v28 = vmul.f32 %v1148_v19, %v1146_v34 }
 0x362   :  { %v1178_v14 = vmul.f32 %v1176_v23, %v1174_v42  ;;  %v1171_v12 = vmul.f32 %v1169_v29, %v1167_v4  ;;  %v1157_v5 = vmul.f32 %v1155_v10, %v1153_v38  ;;  %v1191_v7 = vadd.f32 %v1188_v57, %v1187_v15 }
 0x363   :  { %v1183_v17 = vadd.f32 %v1136_v63, %v1128_v11  ;;  %v1184_v27 = vadd.f32 %v1150_v28, %v1143_v44 }
 0x364   :  { %v1186_v32 = vadd.f32 %v1178_v14, %v1171_v12  ;;  %v1185_v48 = vadd.f32 %v1164_v1, %v1157_v5 }
 0x365   :  { %v1189_v9 = vadd.f32 %v1184_v27, %v1183_v17 }
 0x366   :  { %v1190_v3 = vadd.f32 %v1186_v32, %v1185_v48 }
 0x368   :  { %v1192_v52 = vadd.f32 %v1190_v3, %v1189_v9 }
 0x36a   :  { %v1193_v43 = vadd.f32 %v1192_v52, %v1191_v7 }
 0x36c   :  { %v1198_v53 = vadd.f32 %v1196_v62, %v1193_v43 }
 0x36e   :  { %v1236_v59 = vmul.f32 -1.442695, %v1198_v53 }
 0x370   :  { %1437 = vpow2.f32 %v1236_v59 }
 0x376   :  { %v1438_v39 = vpop.eup %1437 }
 0x377   :  { %v1202_v50 = vadd.f32 1.0, %v1438_v39 }
 0x379   :  { %1439 = vrcp.f32 %v1202_v50  ;;  %v1214_v8 = vand.u32 2147483648, %v1202_v50  ;;  %v1212_v33 = vand.u32 2147483647, %v1202_v50  ;;  %vm1208_vm8 = vweird.f32 %v1202_v50 }
 0x37b   :  { %v1215_v21 = vor.u32 1.1754944e-38, %v1214_v8  ;;  %vm1213_vm11 = vcmp.eq.f32.partialorder %v1212_v33, 8.507059e+37 }
 0x37f   :  { %v1440_v51 = vpop.eup %1439 }
 0x380   :  { %v1204_v18 = vmul.f32 %v1440_v51, %v1202_v50  ;;  %vm1209_vm7 = vweird.f32 %v1440_v51 }
 0x381   :  { %vm1210_vm9 = vmor %vm1208_vm8, %vm1209_vm7 }
 0x382   :  { %v1205_v34 = vsub.f32 1.0, %v1204_v18 }
 0x384   :  { %v1206_v30 = vmul.f32 %v1440_v51, %v1205_v34 }
 0x386   :  { %v1207_v26 = vadd.f32 %v1440_v51, %v1206_v30 }
 0x388   :  { %v1211_v6 = vsel %vm1210_vm9, %v1440_v51, %v1207_v26 }
 0x389   :  { %v1216_v37 = vsel %vm1213_vm11, %v1215_v21, %v1211_v6 }
 0x38a   :  { %1219 = vst.msk [vmem:[#allocation2] sm:$0x1] %vm1218_vm10, %v1216_v37 }
 0x38b   :  { %1230 = dma.vmem_to_hbm [thread:$0]  %s1226_s30, 16, %s1228_s5, [#allocation3]  }
 0x38c   :  { %1466 = dma.done.wait [#allocation3], 16  }
 0x38d   :  { %1467 = vsyncadd [#allocation3], 4294967280 }
 0x38e   :  { %1235 = vsyncpa [#allocation3], 1 }

</bundles_post_ra>
